<compile_context>
chip_gen: v7x
topology: tpu7x:2x2x1
jax: 0.10.0
libtpu: 0.0.40
codegen_flags: <defaults>
</compile_context>

<pallas_src>
import functools

import numpy as np
import jax
import jax.numpy as jnp
from jax.experimental import pallas as pl
from jax.experimental.pallas import tpu as pltpu

H = W = 4          # fixed output spatial size of the initial block
HW = H * W
ALPHA = 1e-8       # PixelwiseNorm epsilon
NEG_SLOPE = 0.2    # LeakyReLU slope
LANE = 128         # TPU lane width
SUB = 8            # TPU sublane width


def _round_up(v, m):
    return (v + m - 1) // m * m


def _gen_initial_block_kernel(x_ref, w1_ref, b1_ref, w2_ref, b2_ref, o_ref, *, inv_c):
    """One batch tile: conv-transpose matmul, 9-tap 3x3 conv, leaky-relus, pixel norm.

    Internal activation layout is pixel-major: row = p*TB + b, p = i*4 + j,
    channels on the lane axis.
    """
    TB, Cp = x_ref.shape

    # ---- conv_transpose (1x1 -> 4x4): one bf16 matmul, f32 accumulate -------
    xb = x_ref[...].astype(jnp.bfloat16)
    h1f = jnp.dot(xb, w1_ref[...], preferred_element_type=jnp.float32)   # (TB, 16*Cp)

    # Relayout to pixel-major (16*TB, Cp) via 16 lane-aligned slices + sublane concat.
    h1 = jnp.concatenate([h1f[:, p * Cp:(p + 1) * Cp] for p in range(HW)], axis=0)
    h1 = h1 + b1_ref[...]                                                # bias per channel
    h1 = jnp.where(h1 >= 0, h1, NEG_SLOPE * h1)                          # LeakyReLU (f32)

    # ---- 3x3 / pad=1 conv: 9 per-tap (Cp, Cp) matmuls at full M = 16*TB -----
    h1b = h1.astype(jnp.bfloat16)
    taps = [jnp.dot(h1b, w2_ref[k], preferred_element_type=jnp.float32)  # (16*TB, Cp)
            for k in range(9)]

    # Static spatial shift-add: output pixel (pi,pj) sums the tap results taken
    # at input pixel (pi+ki-1, pj+kj-1); zero-padding == skipping OOB taps.
    out_parts = []
    for pi in range(H):
        for pj in range(W):
            acc = None
            for ki in range(3):
                for kj in range(3):
                    qi, qj = pi + ki - 1, pj + kj - 1
                    if 0 <= qi < H and 0 <= qj < W:
                        q = qi * W + qj
                        piece = taps[ki * 3 + kj][q * TB:(q + 1) * TB, :]
                        acc = piece if acc is None else acc + piece
            out_parts.append(acc)
    h2 = jnp.concatenate(out_parts, axis=0) + b2_ref[...]                # (16*TB, Cp)
    h2 = jnp.where(h2 >= 0, h2, NEG_SLOPE * h2)                          # LeakyReLU (f32)

    # ---- PixelwiseNorm (f32): lane reduce, rsqrt before broadcast -----------
    # Padded channels are exactly zero, so dividing by the TRUE channel count
    # (inv_c) reproduces mean over the real channels.
    ss = jnp.sum(h2 * h2, axis=-1, keepdims=True)                        # (16*TB, 1)
    inv = jax.lax.rsqrt(ss * inv_c + ALPHA)                              # EUP rsqrt
    o_ref[...] = h2 * inv


def gen_initial_block(x, w1, b1, w2, b2, *, block_b=8):
    """x: (B, C) latent. w1: (C, C, 4, 4) conv-transpose weight (torch (in, out, kh, kw)).
    w2: (C, C, 3, 3) conv weight (torch (out, in, kh, kw)). Returns (B, C, 4, 4)."""
    B, C = x.shape
    Cp = _round_up(max(C, LANE), LANE)              # channels padded to lane multiple
    TB = max(SUB, _round_up(block_b, SUB))          # batch tile (sublane multiple)
    Bp = _round_up(max(B, TB), TB)
    nb = Bp // TB

    scale1 = np.sqrt(2.0) / np.sqrt(C)              # EqualizedConvTranspose2d: fan_in = C_in
    scale2 = np.sqrt(2.0) / np.sqrt(3 * 3 * C)      # EqualizedConv2d: fan_in = k*k*C_in

    w1_np = np.asarray(w1, np.float32) * scale1     # (C, C, 4, 4)
    w2_np = np.asarray(w2, np.float32) * scale2     # (C, C, 3, 3)
    b1_np = np.asarray(b1, np.float32)
    b2_np = np.asarray(b2, np.float32)

    # conv-transpose weight flattened pixel-major: W1[c, p*Cp + o] = w1s[c, o, pi, pj]
    w1p = np.zeros((Cp, HW, Cp), np.float32)
    w1p[:C, :, :C] = w1_np.transpose(0, 2, 3, 1).reshape(C, HW, C)
    w1p = w1p.reshape(Cp, HW * Cp)

    # 3x3 tap matrices: W2[k, c, o] = w2s[o, c, ki, kj], k = ki*3 + kj
    w2p = np.zeros((9, Cp, Cp), np.float32)
    w2p[:, :C, :C] = w2_np.transpose(2, 3, 1, 0).reshape(9, C, C)

    b1p = np.zeros((1, Cp), np.float32); b1p[0, :C] = b1_np
    b2p = np.zeros((1, Cp), np.float32); b2p[0, :C] = b2_np

    xp = jnp.zeros((Bp, Cp), jnp.float32).at[:B, :C].set(jnp.asarray(x, jnp.float32))

    kernel = functools.partial(_gen_initial_block_kernel, inv_c=1.0 / float(C))

    flops = int(2 * Bp * HW * Cp * Cp * (1 + 9))               # conv1 + 9-tap conv2
    bytes_acc = int(xp.size * 4 + w1p.size * 2 + w2p.size * 2
                    + (b1p.size + b2p.size) * 4 + nb * HW * TB * Cp * 4)

    out_flat = pl.pallas_call(
        kernel,
        out_shape=jax.ShapeDtypeStruct((nb * HW * TB, Cp), jnp.float32),
        grid_spec=pltpu.PrefetchScalarGridSpec(
            num_scalar_prefetch=0,
            grid=(nb,),
            in_specs=[
                pl.BlockSpec((TB, Cp), lambda i: (i, 0)),        # x: streamed per batch tile
                pl.BlockSpec((Cp, HW * Cp), lambda i: (0, 0)),   # w1: VMEM-resident
                pl.BlockSpec((1, Cp), lambda i: (0, 0)),         # b1
                pl.BlockSpec((9, Cp, Cp), lambda i: (0, 0, 0)),  # w2 taps: VMEM-resident
                pl.BlockSpec((1, Cp), lambda i: (0, 0)),         # b2
            ],
            out_specs=pl.BlockSpec((HW * TB, Cp), lambda i: (i, 0)),
        ),
        compiler_params=pltpu.CompilerParams(
            dimension_semantics=("parallel",),
            vmem_limit_bytes=64 * 1024 * 1024,
        ),
        cost_estimate=pl.CostEstimate(
            flops=flops, transcendentals=int(Bp * HW), bytes_accessed=bytes_acc),
    )(
        xp,
        jnp.asarray(w1p, jnp.bfloat16),
        jnp.asarray(b1p),
        jnp.asarray(w2p, jnp.bfloat16),
        jnp.asarray(b2p),
    )

    # rows: i*(16*TB) + p*TB + b_local  ->  (B, C, 4, 4)
    out = out_flat.reshape(nb, HW, TB, Cp).transpose(0, 2, 3, 1).reshape(Bp, Cp, H, W)
    return out[:B, :C]


def _reference(x, w1, b1, w2, b2):
    """Pure-JAX f32 reference of the PyTorch forward (for the correctness check)."""
    B, C = x.shape
    scale1 = np.sqrt(2.0) / np.sqrt(C)
    scale2 = np.sqrt(2.0) / np.sqrt(9 * C)
    w1s = w1 * scale1
    w2s = w2 * scale2
    h1 = jnp.einsum('bc,coij->boij', x, w1s) + b1[None, :, None, None]
    h1 = jnp.where(h1 >= 0, h1, NEG_SLOPE * h1)
    h1p = jnp.pad(h1, ((0, 0), (0, 0), (1, 1), (1, 1)))
    h2 = jnp.zeros_like(h1)
    for ki in range(3):
        for kj in range(3):
            h2 = h2 + jnp.einsum('bcij,oc->boij',
                                 h1p[:, :, ki:ki + H, kj:kj + W], w2s[:, :, ki, kj])
    h2 = h2 + b2[None, :, None, None]
    h2 = jnp.where(h2 >= 0, h2, NEG_SLOPE * h2)
    denom = jnp.sqrt(jnp.mean(h2 ** 2, axis=1, keepdims=True) + ALPHA)
    return h2 / denom


if __name__ == "__main__":
    B, C = 2, 4
    key = jax.random.PRNGKey(0)
    kx, kw1, kw2 = jax.random.split(key, 3)

    x = jax.random.normal(kx, (B, C), jnp.float32)
    # EqualizedConvTranspose2d weight: torch layout (in_channels, out_channels, 4, 4)
    w1 = jax.random.normal(kw1, (C, C, 4, 4), jnp.float32)
    b1 = jnp.zeros((C,), jnp.float32)          # torch.nn.init.zeros_(bias)
    # EqualizedConv2d weight: torch layout (out_channels, in_channels, 3, 3)
    w2 = jax.random.normal(kw2, (C, C, 3, 3), jnp.float32)
    b2 = jnp.zeros((C,), jnp.float32)

    out = gen_initial_block(x, w1, b1, w2, b2)
    out = jax.block_until_ready(out)

    ref = jax.block_until_ready(_reference(x, w1, b1, w2, b2))
    # bf16 matmul operands (f32 accumulate / pixel-norm) -> relaxed tolerance.
    np.testing.assert_allclose(np.asarray(out), np.asarray(ref), rtol=3e-2, atol=3e-2)

    print("KERNEL_OK")
</pallas_src>

<mosaic_0001>
module attributes {stable_mosaic.version = 11 : i64} {
  func.func @_gen_initial_block_kernel(%arg0: i32, %arg1: memref<8x128xf32, #tpu.memory_space<vmem>>, %arg2: memref<128x2048xbf16, #tpu.memory_space<vmem>>, %arg3: memref<1x128xf32, #tpu.memory_space<vmem>>, %arg4: memref<9x128x128xbf16, #tpu.memory_space<vmem>>, %arg5: memref<1x128xf32, #tpu.memory_space<vmem>>, %arg6: memref<128x128xf32, #tpu.memory_space<vmem>>) attributes {dimension_semantics = [#tpu.dimension_semantics<parallel>], iteration_bounds = array<i64: 1>, scalar_prefetch = 0 : i64, scratch_operands = 0 : i64, tpu.core_type = #tpu.core_type<tc>, window_params = [{transform_indices = @transform_0, window_bounds = array<i64: 8, 128>}, {pipeline_mode = #tpu.pipeline_mode<synchronous>, transform_indices = @transform_1, window_bounds = array<i64: 128, 2048>}, {pipeline_mode = #tpu.pipeline_mode<synchronous>, transform_indices = @transform_2, window_bounds = array<i64: 1, 128>}, {pipeline_mode = #tpu.pipeline_mode<synchronous>, transform_indices = @transform_3, window_bounds = array<i64: 9, 128, 128>}, {pipeline_mode = #tpu.pipeline_mode<synchronous>, transform_indices = @transform_4, window_bounds = array<i64: 1, 128>}, {transform_indices = @transform_5, window_bounds = array<i64: 128, 128>}]} {
    %c0 = arith.constant 0 : index
    %c0_0 = arith.constant 0 : index
    %0 = vector.load %arg1[%c0, %c0_0] : memref<8x128xf32, #tpu.memory_space<vmem>>, vector<8x128xf32>
    %1 = arith.truncf %0 : vector<8x128xf32> to vector<8x128xbf16>
    %c0_1 = arith.constant 0 : index
    %c0_2 = arith.constant 0 : index
    %2 = vector.load %arg2[%c0_1, %c0_2] : memref<128x2048xbf16, #tpu.memory_space<vmem>>, vector<128x2048xbf16>
    %cst = arith.constant dense<0.000000e+00> : vector<8x2048xf32>
    %3 = tpu.matmul %1, %2, %cst {dimension_numbers = #tpu.dot_dimension_numbers<[1], [0], [0], [1], [0, 0, 1, 1], [], []>} : vector<8x128xbf16>, vector<128x2048xbf16>, vector<8x2048xf32> -> vector<8x2048xf32>
    %4 = vector.extract_strided_slice %3 {offsets = [0, 0], sizes = [8, 128], strides = [1, 1]} : vector<8x2048xf32> to vector<8x128xf32>
    %5 = vector.extract_strided_slice %3 {offsets = [0, 128], sizes = [8, 128], strides = [1, 1]} : vector<8x2048xf32> to vector<8x128xf32>
    %6 = vector.extract_strided_slice %3 {offsets = [0, 256], sizes = [8, 128], strides = [1, 1]} : vector<8x2048xf32> to vector<8x128xf32>
    %7 = vector.extract_strided_slice %3 {offsets = [0, 384], sizes = [8, 128], strides = [1, 1]} : vector<8x2048xf32> to vector<8x128xf32>
    %8 = vector.extract_strided_slice %3 {offsets = [0, 512], sizes = [8, 128], strides = [1, 1]} : vector<8x2048xf32> to vector<8x128xf32>
    %9 = vector.extract_strided_slice %3 {offsets = [0, 640], sizes = [8, 128], strides = [1, 1]} : vector<8x2048xf32> to vector<8x128xf32>
    %10 = vector.extract_strided_slice %3 {offsets = [0, 768], sizes = [8, 128], strides = [1, 1]} : vector<8x2048xf32> to vector<8x128xf32>
    %11 = vector.extract_strided_slice %3 {offsets = [0, 896], sizes = [8, 128], strides = [1, 1]} : vector<8x2048xf32> to vector<8x128xf32>
    %12 = vector.extract_strided_slice %3 {offsets = [0, 1024], sizes = [8, 128], strides = [1, 1]} : vector<8x2048xf32> to vector<8x128xf32>
    %13 = vector.extract_strided_slice %3 {offsets = [0, 1152], sizes = [8, 128], strides = [1, 1]} : vector<8x2048xf32> to vector<8x128xf32>
    %14 = vector.extract_strided_slice %3 {offsets = [0, 1280], sizes = [8, 128], strides = [1, 1]} : vector<8x2048xf32> to vector<8x128xf32>
    %15 = vector.extract_strided_slice %3 {offsets = [0, 1408], sizes = [8, 128], strides = [1, 1]} : vector<8x2048xf32> to vector<8x128xf32>
    %16 = vector.extract_strided_slice %3 {offsets = [0, 1536], sizes = [8, 128], strides = [1, 1]} : vector<8x2048xf32> to vector<8x128xf32>
    %17 = vector.extract_strided_slice %3 {offsets = [0, 1664], sizes = [8, 128], strides = [1, 1]} : vector<8x2048xf32> to vector<8x128xf32>
    %18 = vector.extract_strided_slice %3 {offsets = [0, 1792], sizes = [8, 128], strides = [1, 1]} : vector<8x2048xf32> to vector<8x128xf32>
    %19 = vector.extract_strided_slice %3 {offsets = [0, 1920], sizes = [8, 128], strides = [1, 1]} : vector<8x2048xf32> to vector<8x128xf32>
    %20 = tpu.concatenate %4, %5, %6, %7, %8, %9, %10, %11, %12, %13, %14, %15, %16, %17, %18, %19 in 0 : vector<8x128xf32>, vector<8x128xf32>, vector<8x128xf32>, vector<8x128xf32>, vector<8x128xf32>, vector<8x128xf32>, vector<8x128xf32>, vector<8x128xf32>, vector<8x128xf32>, vector<8x128xf32>, vector<8x128xf32>, vector<8x128xf32>, vector<8x128xf32>, vector<8x128xf32>, vector<8x128xf32>, vector<8x128xf32> -> vector<128x128xf32>
    %c0_3 = arith.constant 0 : index
    %c0_4 = arith.constant 0 : index
    %21 = vector.load %arg3[%c0_3, %c0_4] : memref<1x128xf32, #tpu.memory_space<vmem>>, vector<1x128xf32>
    %22 = vector.broadcast %21 : vector<1x128xf32> to vector<128x128xf32>
    %23 = arith.addf %20, %22 : vector<128x128xf32>
    %cst_5 = arith.constant 0.000000e+00 : f32
    %24 = vector.broadcast %cst_5 : f32 to vector<128x128xf32>
    %25 = arith.cmpf oge, %23, %24 : vector<128x128xf32>
    %cst_6 = arith.constant 2.000000e-01 : f32
    %26 = vector.broadcast %cst_6 : f32 to vector<128x128xf32>
    %27 = arith.mulf %26, %23 : vector<128x128xf32>
    %28 = arith.select %25, %23, %27 : vector<128x128xi1>, vector<128x128xf32>
    %29 = arith.truncf %28 : vector<128x128xf32> to vector<128x128xbf16>
    %c0_7 = arith.constant 0 : index
    %c0_8 = arith.constant 0 : index
    %c0_9 = arith.constant 0 : index
    %30 = vector.load %arg4[%c0_7, %c0_8, %c0_9] : memref<9x128x128xbf16, #tpu.memory_space<vmem>>, vector<1x128x128xbf16>
    %31 = vector.shape_cast %30 : vector<1x128x128xbf16> to vector<128x128xbf16>
    %cst_10 = arith.constant dense<0.000000e+00> : vector<128x128xf32>
    %32 = tpu.matmul %29, %31, %cst_10 {dimension_numbers = #tpu.dot_dimension_numbers<[1], [0], [0], [1], [0, 0, 1, 1], [], []>} : vector<128x128xbf16>, vector<128x128xbf16>, vector<128x128xf32> -> vector<128x128xf32>
    %c1 = arith.constant 1 : index
    %c0_11 = arith.constant 0 : index
    %c0_12 = arith.constant 0 : index
    %33 = vector.load %arg4[%c1, %c0_11, %c0_12] : memref<9x128x128xbf16, #tpu.memory_space<vmem>>, vector<1x128x128xbf16>
    %34 = vector.shape_cast %33 : vector<1x128x128xbf16> to vector<128x128xbf16>
    %cst_13 = arith.constant dense<0.000000e+00> : vector<128x128xf32>
    %35 = tpu.matmul %29, %34, %cst_13 {dimension_numbers = #tpu.dot_dimension_numbers<[1], [0], [0], [1], [0, 0, 1, 1], [], []>} : vector<128x128xbf16>, vector<128x128xbf16>, vector<128x128xf32> -> vector<128x128xf32>
    %c2 = arith.constant 2 : index
    %c0_14 = arith.constant 0 : index
    %c0_15 = arith.constant 0 : index
    %36 = vector.load %arg4[%c2, %c0_14, %c0_15] : memref<9x128x128xbf16, #tpu.memory_space<vmem>>, vector<1x128x128xbf16>
    %37 = vector.shape_cast %36 : vector<1x128x128xbf16> to vector<128x128xbf16>
    %cst_16 = arith.constant dense<0.000000e+00> : vector<128x128xf32>
    %38 = tpu.matmul %29, %37, %cst_16 {dimension_numbers = #tpu.dot_dimension_numbers<[1], [0], [0], [1], [0, 0, 1, 1], [], []>} : vector<128x128xbf16>, vector<128x128xbf16>, vector<128x128xf32> -> vector<128x128xf32>
    %c3 = arith.constant 3 : index
    %c0_17 = arith.constant 0 : index
    %c0_18 = arith.constant 0 : index
    %39 = vector.load %arg4[%c3, %c0_17, %c0_18] : memref<9x128x128xbf16, #tpu.memory_space<vmem>>, vector<1x128x128xbf16>
    %40 = vector.shape_cast %39 : vector<1x128x128xbf16> to vector<128x128xbf16>
    %cst_19 = arith.constant dense<0.000000e+00> : vector<128x128xf32>
    %41 = tpu.matmul %29, %40, %cst_19 {dimension_numbers = #tpu.dot_dimension_numbers<[1], [0], [0], [1], [0, 0, 1, 1], [], []>} : vector<128x128xbf16>, vector<128x128xbf16>, vector<128x128xf32> -> vector<128x128xf32>
    %c4 = arith.constant 4 : index
    %c0_20 = arith.constant 0 : index
    %c0_21 = arith.constant 0 : index
    %42 = vector.load %arg4[%c4, %c0_20, %c0_21] : memref<9x128x128xbf16, #tpu.memory_space<vmem>>, vector<1x128x128xbf16>
    %43 = vector.shape_cast %42 : vector<1x128x128xbf16> to vector<128x128xbf16>
    %cst_22 = arith.constant dense<0.000000e+00> : vector<128x128xf32>
    %44 = tpu.matmul %29, %43, %cst_22 {dimension_numbers = #tpu.dot_dimension_numbers<[1], [0], [0], [1], [0, 0, 1, 1], [], []>} : vector<128x128xbf16>, vector<128x128xbf16>, vector<128x128xf32> -> vector<128x128xf32>
    %c5 = arith.constant 5 : index
    %c0_23 = arith.constant 0 : index
    %c0_24 = arith.constant 0 : index
    %45 = vector.load %arg4[%c5, %c0_23, %c0_24] : memref<9x128x128xbf16, #tpu.memory_space<vmem>>, vector<1x128x128xbf16>
    %46 = vector.shape_cast %45 : vector<1x128x128xbf16> to vector<128x128xbf16>
    %cst_25 = arith.constant dense<0.000000e+00> : vector<128x128xf32>
    %47 = tpu.matmul %29, %46, %cst_25 {dimension_numbers = #tpu.dot_dimension_numbers<[1], [0], [0], [1], [0, 0, 1, 1], [], []>} : vector<128x128xbf16>, vector<128x128xbf16>, vector<128x128xf32> -> vector<128x128xf32>
    %c6 = arith.constant 6 : index
    %c0_26 = arith.constant 0 : index
    %c0_27 = arith.constant 0 : index
    %48 = vector.load %arg4[%c6, %c0_26, %c0_27] : memref<9x128x128xbf16, #tpu.memory_space<vmem>>, vector<1x128x128xbf16>
    %49 = vector.shape_cast %48 : vector<1x128x128xbf16> to vector<128x128xbf16>
    %cst_28 = arith.constant dense<0.000000e+00> : vector<128x128xf32>
    %50 = tpu.matmul %29, %49, %cst_28 {dimension_numbers = #tpu.dot_dimension_numbers<[1], [0], [0], [1], [0, 0, 1, 1], [], []>} : vector<128x128xbf16>, vector<128x128xbf16>, vector<128x128xf32> -> vector<128x128xf32>
    %c7 = arith.constant 7 : index
    %c0_29 = arith.constant 0 : index
    %c0_30 = arith.constant 0 : index
    %51 = vector.load %arg4[%c7, %c0_29, %c0_30] : memref<9x128x128xbf16, #tpu.memory_space<vmem>>, vector<1x128x128xbf16>
    %52 = vector.shape_cast %51 : vector<1x128x128xbf16> to vector<128x128xbf16>
    %cst_31 = arith.constant dense<0.000000e+00> : vector<128x128xf32>
    %53 = tpu.matmul %29, %52, %cst_31 {dimension_numbers = #tpu.dot_dimension_numbers<[1], [0], [0], [1], [0, 0, 1, 1], [], []>} : vector<128x128xbf16>, vector<128x128xbf16>, vector<128x128xf32> -> vector<128x128xf32>
    %c8 = arith.constant 8 : index
    %c0_32 = arith.constant 0 : index
    %c0_33 = arith.constant 0 : index
    %54 = vector.load %arg4[%c8, %c0_32, %c0_33] : memref<9x128x128xbf16, #tpu.memory_space<vmem>>, vector<1x128x128xbf16>
    %55 = vector.shape_cast %54 : vector<1x128x128xbf16> to vector<128x128xbf16>
    %cst_34 = arith.constant dense<0.000000e+00> : vector<128x128xf32>
    %56 = tpu.matmul %29, %55, %cst_34 {dimension_numbers = #tpu.dot_dimension_numbers<[1], [0], [0], [1], [0, 0, 1, 1], [], []>} : vector<128x128xbf16>, vector<128x128xbf16>, vector<128x128xf32> -> vector<128x128xf32>
    %57 = vector.extract_strided_slice %44 {offsets = [0, 0], sizes = [8, 128], strides = [1, 1]} : vector<128x128xf32> to vector<8x128xf32>
    %58 = vector.extract_strided_slice %47 {offsets = [8, 0], sizes = [8, 128], strides = [1, 1]} : vector<128x128xf32> to vector<8x128xf32>
    %59 = arith.addf %57, %58 : vector<8x128xf32>
    %60 = vector.extract_strided_slice %53 {offsets = [32, 0], sizes = [8, 128], strides = [1, 1]} : vector<128x128xf32> to vector<8x128xf32>
    %61 = arith.addf %59, %60 : vector<8x128xf32>
    %62 = vector.extract_strided_slice %56 {offsets = [40, 0], sizes = [8, 128], strides = [1, 1]} : vector<128x128xf32> to vector<8x128xf32>
    %63 = arith.addf %61, %62 : vector<8x128xf32>
    %64 = vector.extract_strided_slice %41 {offsets = [0, 0], sizes = [8, 128], strides = [1, 1]} : vector<128x128xf32> to vector<8x128xf32>
    %65 = vector.extract_strided_slice %44 {offsets = [8, 0], sizes = [8, 128], strides = [1, 1]} : vector<128x128xf32> to vector<8x128xf32>
    %66 = arith.addf %64, %65 : vector<8x128xf32>
    %67 = vector.extract_strided_slice %47 {offsets = [16, 0], sizes = [8, 128], strides = [1, 1]} : vector<128x128xf32> to vector<8x128xf32>
    %68 = arith.addf %66, %67 : vector<8x128xf32>
    %69 = vector.extract_strided_slice %50 {offsets = [32, 0], sizes = [8, 128], strides = [1, 1]} : vector<128x128xf32> to vector<8x128xf32>
    %70 = arith.addf %68, %69 : vector<8x128xf32>
    %71 = vector.extract_strided_slice %53 {offsets = [40, 0], sizes = [8, 128], strides = [1, 1]} : vector<128x128xf32> to vector<8x128xf32>
    %72 = arith.addf %70, %71 : vector<8x128xf32>
    %73 = vector.extract_strided_slice %56 {offsets = [48, 0], sizes = [8, 128], strides = [1, 1]} : vector<128x128xf32> to vector<8x128xf32>
    %74 = arith.addf %72, %73 : vector<8x128xf32>
    %75 = vector.extract_strided_slice %41 {offsets = [8, 0], sizes = [8, 128], strides = [1, 1]} : vector<128x128xf32> to vector<8x128xf32>
    %76 = vector.extract_strided_slice %44 {offsets = [16, 0], sizes = [8, 128], strides = [1, 1]} : vector<128x128xf32> to vector<8x128xf32>
    %77 = arith.addf %75, %76 : vector<8x128xf32>
    %78 = vector.extract_strided_slice %47 {offsets = [24, 0], sizes = [8, 128], strides = [1, 1]} : vector<128x128xf32> to vector<8x128xf32>
    %79 = arith.addf %77, %78 : vector<8x128xf32>
    %80 = vector.extract_strided_slice %50 {offsets = [40, 0], sizes = [8, 128], strides = [1, 1]} : vector<128x128xf32> to vector<8x128xf32>
    %81 = arith.addf %79, %80 : vector<8x128xf32>
    %82 = vector.extract_strided_slice %53 {offsets = [48, 0], sizes = [8, 128], strides = [1, 1]} : vector<128x128xf32> to vector<8x128xf32>
    %83 = arith.addf %81, %82 : vector<8x128xf32>
    %84 = vector.extract_strided_slice %56 {offsets = [56, 0], sizes = [8, 128], strides = [1, 1]} : vector<128x128xf32> to vector<8x128xf32>
    %85 = arith.addf %83, %84 : vector<8x128xf32>
    %86 = vector.extract_strided_slice %41 {offsets = [16, 0], sizes = [8, 128], strides = [1, 1]} : vector<128x128xf32> to vector<8x128xf32>
    %87 = vector.extract_strided_slice %44 {offsets = [24, 0], sizes = [8, 128], strides = [1, 1]} : vector<128x128xf32> to vector<8x128xf32>
    %88 = arith.addf %86, %87 : vector<8x128xf32>
    %89 = vector.extract_strided_slice %50 {offsets = [48, 0], sizes = [8, 128], strides = [1, 1]} : vector<128x128xf32> to vector<8x128xf32>
    %90 = arith.addf %88, %89 : vector<8x128xf32>
    %91 = vector.extract_strided_slice %53 {offsets = [56, 0], sizes = [8, 128], strides = [1, 1]} : vector<128x128xf32> to vector<8x128xf32>
    %92 = arith.addf %90, %91 : vector<8x128xf32>
    %93 = vector.extract_strided_slice %35 {offsets = [0, 0], sizes = [8, 128], strides = [1, 1]} : vector<128x128xf32> to vector<8x128xf32>
    %94 = vector.extract_strided_slice %38 {offsets = [8, 0], sizes = [8, 128], strides = [1, 1]} : vector<128x128xf32> to vector<8x128xf32>
    %95 = arith.addf %93, %94 : vector<8x128xf32>
    %96 = vector.extract_strided_slice %44 {offsets = [32, 0], sizes = [8, 128], strides = [1, 1]} : vector<128x128xf32> to vector<8x128xf32>
    %97 = arith.addf %95, %96 : vector<8x128xf32>
    %98 = vector.extract_strided_slice %47 {offsets = [40, 0], sizes = [8, 128], strides = [1, 1]} : vector<128x128xf32> to vector<8x128xf32>
    %99 = arith.addf %97, %98 : vector<8x128xf32>
    %100 = vector.extract_strided_slice %53 {offsets = [64, 0], sizes = [8, 128], strides = [1, 1]} : vector<128x128xf32> to vector<8x128xf32>
    %101 = arith.addf %99, %100 : vector<8x128xf32>
    %102 = vector.extract_strided_slice %56 {offsets = [72, 0], sizes = [8, 128], strides = [1, 1]} : vector<128x128xf32> to vector<8x128xf32>
    %103 = arith.addf %101, %102 : vector<8x128xf32>
    %104 = vector.extract_strided_slice %32 {offsets = [0, 0], sizes = [8, 128], strides = [1, 1]} : vector<128x128xf32> to vector<8x128xf32>
    %105 = vector.extract_strided_slice %35 {offsets = [8, 0], sizes = [8, 128], strides = [1, 1]} : vector<128x128xf32> to vector<8x128xf32>
    %106 = arith.addf %104, %105 : vector<8x128xf32>
    %107 = vector.extract_strided_slice %38 {offsets = [16, 0], sizes = [8, 128], strides = [1, 1]} : vector<128x128xf32> to vector<8x128xf32>
    %108 = arith.addf %106, %107 : vector<8x128xf32>
    %109 = vector.extract_strided_slice %41 {offsets = [32, 0], sizes = [8, 128], strides = [1, 1]} : vector<128x128xf32> to vector<8x128xf32>
    %110 = arith.addf %108, %109 : vector<8x128xf32>
    %111 = vector.extract_strided_slice %44 {offsets = [40, 0], sizes = [8, 128], strides = [1, 1]} : vector<128x128xf32> to vector<8x128xf32>
    %112 = arith.addf %110, %111 : vector<8x128xf32>
    %113 = vector.extract_strided_slice %47 {offsets = [48, 0], sizes = [8, 128], strides = [1, 1]} : vector<128x128xf32> to vector<8x128xf32>
    %114 = arith.addf %112, %113 : vector<8x128xf32>
    %115 = vector.extract_strided_slice %50 {offsets = [64, 0], sizes = [8, 128], strides = [1, 1]} : vector<128x128xf32> to vector<8x128xf32>
    %116 = arith.addf %114, %115 : vector<8x128xf32>
    %117 = vector.extract_strided_slice %53 {offsets = [72, 0], sizes = [8, 128], strides = [1, 1]} : vector<128x128xf32> to vector<8x128xf32>
    %118 = arith.addf %116, %117 : vector<8x128xf32>
    %119 = vector.extract_strided_slice %56 {offsets = [80, 0], sizes = [8, 128], strides = [1, 1]} : vector<128x128xf32> to vector<8x128xf32>
    %120 = arith.addf %118, %119 : vector<8x128xf32>
    %121 = vector.extract_strided_slice %32 {offsets = [8, 0], sizes = [8, 128], strides = [1, 1]} : vector<128x128xf32> to vector<8x128xf32>
    %122 = vector.extract_strided_slice %35 {offsets = [16, 0], sizes = [8, 128], strides = [1, 1]} : vector<128x128xf32> to vector<8x128xf32>
    %123 = arith.addf %121, %122 : vector<8x128xf32>
    %124 = vector.extract_strided_slice %38 {offsets = [24, 0], sizes = [8, 128], strides = [1, 1]} : vector<128x128xf32> to vector<8x128xf32>
    %125 = arith.addf %123, %124 : vector<8x128xf32>
    %126 = vector.extract_strided_slice %41 {offsets = [40, 0], sizes = [8, 128], strides = [1, 1]} : vector<128x128xf32> to vector<8x128xf32>
    %127 = arith.addf %125, %126 : vector<8x128xf32>
    %128 = vector.extract_strided_slice %44 {offsets = [48, 0], sizes = [8, 128], strides = [1, 1]} : vector<128x128xf32> to vector<8x128xf32>
    %129 = arith.addf %127, %128 : vector<8x128xf32>
    %130 = vector.extract_strided_slice %47 {offsets = [56, 0], sizes = [8, 128], strides = [1, 1]} : vector<128x128xf32> to vector<8x128xf32>
    %131 = arith.addf %129, %130 : vector<8x128xf32>
    %132 = vector.extract_strided_slice %50 {offsets = [72, 0], sizes = [8, 128], strides = [1, 1]} : vector<128x128xf32> to vector<8x128xf32>
    %133 = arith.addf %131, %132 : vector<8x128xf32>
    %134 = vector.extract_strided_slice %53 {offsets = [80, 0], sizes = [8, 128], strides = [1, 1]} : vector<128x128xf32> to vector<8x128xf32>
    %135 = arith.addf %133, %134 : vector<8x128xf32>
    %136 = vector.extract_strided_slice %56 {offsets = [88, 0], sizes = [8, 128], strides = [1, 1]} : vector<128x128xf32> to vector<8x128xf32>
    %137 = arith.addf %135, %136 : vector<8x128xf32>
    %138 = vector.extract_strided_slice %32 {offsets = [16, 0], sizes = [8, 128], strides = [1, 1]} : vector<128x128xf32> to vector<8x128xf32>
    %139 = vector.extract_strided_slice %35 {offsets = [24, 0], sizes = [8, 128], strides = [1, 1]} : vector<128x128xf32> to vector<8x128xf32>
    %140 = arith.addf %138, %139 : vector<8x128xf32>
    %141 = vector.extract_strided_slice %41 {offsets = [48, 0], sizes = [8, 128], strides = [1, 1]} : vector<128x128xf32> to vector<8x128xf32>
    %142 = arith.addf %140, %141 : vector<8x128xf32>
    %143 = vector.extract_strided_slice %44 {offsets = [56, 0], sizes = [8, 128], strides = [1, 1]} : vector<128x128xf32> to vector<8x128xf32>
    %144 = arith.addf %142, %143 : vector<8x128xf32>
    %145 = vector.extract_strided_slice %50 {offsets = [80, 0], sizes = [8, 128], strides = [1, 1]} : vector<128x128xf32> to vector<8x128xf32>
    %146 = arith.addf %144, %145 : vector<8x128xf32>
    %147 = vector.extract_strided_slice %53 {offsets = [88, 0], sizes = [8, 128], strides = [1, 1]} : vector<128x128xf32> to vector<8x128xf32>
    %148 = arith.addf %146, %147 : vector<8x128xf32>
    %149 = vector.extract_strided_slice %35 {offsets = [32, 0], sizes = [8, 128], strides = [1, 1]} : vector<128x128xf32> to vector<8x128xf32>
    %150 = vector.extract_strided_slice %38 {offsets = [40, 0], sizes = [8, 128], strides = [1, 1]} : vector<128x128xf32> to vector<8x128xf32>
    %151 = arith.addf %149, %150 : vector<8x128xf32>
    %152 = vector.extract_strided_slice %44 {offsets = [64, 0], sizes = [8, 128], strides = [1, 1]} : vector<128x128xf32> to vector<8x128xf32>
    %153 = arith.addf %151, %152 : vector<8x128xf32>
    %154 = vector.extract_strided_slice %47 {offsets = [72, 0], sizes = [8, 128], strides = [1, 1]} : vector<128x128xf32> to vector<8x128xf32>
    %155 = arith.addf %153, %154 : vector<8x128xf32>
    %156 = vector.extract_strided_slice %53 {offsets = [96, 0], sizes = [8, 128], strides = [1, 1]} : vector<128x128xf32> to vector<8x128xf32>
    %157 = arith.addf %155, %156 : vector<8x128xf32>
    %158 = vector.extract_strided_slice %56 {offsets = [104, 0], sizes = [8, 128], strides = [1, 1]} : vector<128x128xf32> to vector<8x128xf32>
    %159 = arith.addf %157, %158 : vector<8x128xf32>
    %160 = vector.extract_strided_slice %32 {offsets = [32, 0], sizes = [8, 128], strides = [1, 1]} : vector<128x128xf32> to vector<8x128xf32>
    %161 = vector.extract_strided_slice %35 {offsets = [40, 0], sizes = [8, 128], strides = [1, 1]} : vector<128x128xf32> to vector<8x128xf32>
    %162 = arith.addf %160, %161 : vector<8x128xf32>
    %163 = vector.extract_strided_slice %38 {offsets = [48, 0], sizes = [8, 128], strides = [1, 1]} : vector<128x128xf32> to vector<8x128xf32>
    %164 = arith.addf %162, %163 : vector<8x128xf32>
    %165 = vector.extract_strided_slice %41 {offsets = [64, 0], sizes = [8, 128], strides = [1, 1]} : vector<128x128xf32> to vector<8x128xf32>
    %166 = arith.addf %164, %165 : vector<8x128xf32>
    %167 = vector.extract_strided_slice %44 {offsets = [72, 0], sizes = [8, 128], strides = [1, 1]} : vector<128x128xf32> to vector<8x128xf32>
    %168 = arith.addf %166, %167 : vector<8x128xf32>
    %169 = vector.extract_strided_slice %47 {offsets = [80, 0], sizes = [8, 128], strides = [1, 1]} : vector<128x128xf32> to vector<8x128xf32>
    %170 = arith.addf %168, %169 : vector<8x128xf32>
    %171 = vector.extract_strided_slice %50 {offsets = [96, 0], sizes = [8, 128], strides = [1, 1]} : vector<128x128xf32> to vector<8x128xf32>
    %172 = arith.addf %170, %171 : vector<8x128xf32>
    %173 = vector.extract_strided_slice %53 {offsets = [104, 0], sizes = [8, 128], strides = [1, 1]} : vector<128x128xf32> to vector<8x128xf32>
    %174 = arith.addf %172, %173 : vector<8x128xf32>
    %175 = vector.extract_strided_slice %56 {offsets = [112, 0], sizes = [8, 128], strides = [1, 1]} : vector<128x128xf32> to vector<8x128xf32>
    %176 = arith.addf %174, %175 : vector<8x128xf32>
    %177 = vector.extract_strided_slice %32 {offsets = [40, 0], sizes = [8, 128], strides = [1, 1]} : vector<128x128xf32> to vector<8x128xf32>
    %178 = vector.extract_strided_slice %35 {offsets = [48, 0], sizes = [8, 128], strides = [1, 1]} : vector<128x128xf32> to vector<8x128xf32>
    %179 = arith.addf %177, %178 : vector<8x128xf32>
    %180 = vector.extract_strided_slice %38 {offsets = [56, 0], sizes = [8, 128], strides = [1, 1]} : vector<128x128xf32> to vector<8x128xf32>
    %181 = arith.addf %179, %180 : vector<8x128xf32>
    %182 = vector.extract_strided_slice %41 {offsets = [72, 0], sizes = [8, 128], strides = [1, 1]} : vector<128x128xf32> to vector<8x128xf32>
    %183 = arith.addf %181, %182 : vector<8x128xf32>
    %184 = vector.extract_strided_slice %44 {offsets = [80, 0], sizes = [8, 128], strides = [1, 1]} : vector<128x128xf32> to vector<8x128xf32>
    %185 = arith.addf %183, %184 : vector<8x128xf32>
    %186 = vector.extract_strided_slice %47 {offsets = [88, 0], sizes = [8, 128], strides = [1, 1]} : vector<128x128xf32> to vector<8x128xf32>
    %187 = arith.addf %185, %186 : vector<8x128xf32>
    %188 = vector.extract_strided_slice %50 {offsets = [104, 0], sizes = [8, 128], strides = [1, 1]} : vector<128x128xf32> to vector<8x128xf32>
    %189 = arith.addf %187, %188 : vector<8x128xf32>
    %190 = vector.extract_strided_slice %53 {offsets = [112, 0], sizes = [8, 128], strides = [1, 1]} : vector<128x128xf32> to vector<8x128xf32>
    %191 = arith.addf %189, %190 : vector<8x128xf32>
    %192 = vector.extract_strided_slice %56 {offsets = [120, 0], sizes = [8, 128], strides = [1, 1]} : vector<128x128xf32> to vector<8x128xf32>
    %193 = arith.addf %191, %192 : vector<8x128xf32>
    %194 = vector.extract_strided_slice %32 {offsets = [48, 0], sizes = [8, 128], strides = [1, 1]} : vector<128x128xf32> to vector<8x128xf32>
    %195 = vector.extract_strided_slice %35 {offsets = [56, 0], sizes = [8, 128], strides = [1, 1]} : vector<128x128xf32> to vector<8x128xf32>
    %196 = arith.addf %194, %195 : vector<8x128xf32>
    %197 = vector.extract_strided_slice %41 {offsets = [80, 0], sizes = [8, 128], strides = [1, 1]} : vector<128x128xf32> to vector<8x128xf32>
    %198 = arith.addf %196, %197 : vector<8x128xf32>
    %199 = vector.extract_strided_slice %44 {offsets = [88, 0], sizes = [8, 128], strides = [1, 1]} : vector<128x128xf32> to vector<8x128xf32>
    %200 = arith.addf %198, %199 : vector<8x128xf32>
    %201 = vector.extract_strided_slice %50 {offsets = [112, 0], sizes = [8, 128], strides = [1, 1]} : vector<128x128xf32> to vector<8x128xf32>
    %202 = arith.addf %200, %201 : vector<8x128xf32>
    %203 = vector.extract_strided_slice %53 {offsets = [120, 0], sizes = [8, 128], strides = [1, 1]} : vector<128x128xf32> to vector<8x128xf32>
    %204 = arith.addf %202, %203 : vector<8x128xf32>
    %205 = vector.extract_strided_slice %35 {offsets = [64, 0], sizes = [8, 128], strides = [1, 1]} : vector<128x128xf32> to vector<8x128xf32>
    %206 = vector.extract_strided_slice %38 {offsets = [72, 0], sizes = [8, 128], strides = [1, 1]} : vector<128x128xf32> to vector<8x128xf32>
    %207 = arith.addf %205, %206 : vector<8x128xf32>
    %208 = vector.extract_strided_slice %44 {offsets = [96, 0], sizes = [8, 128], strides = [1, 1]} : vector<128x128xf32> to vector<8x128xf32>
    %209 = arith.addf %207, %208 : vector<8x128xf32>
    %210 = vector.extract_strided_slice %47 {offsets = [104, 0], sizes = [8, 128], strides = [1, 1]} : vector<128x128xf32> to vector<8x128xf32>
    %211 = arith.addf %209, %210 : vector<8x128xf32>
    %212 = vector.extract_strided_slice %32 {offsets = [64, 0], sizes = [8, 128], strides = [1, 1]} : vector<128x128xf32> to vector<8x128xf32>
    %213 = vector.extract_strided_slice %35 {offsets = [72, 0], sizes = [8, 128], strides = [1, 1]} : vector<128x128xf32> to vector<8x128xf32>
    %214 = arith.addf %212, %213 : vector<8x128xf32>
    %215 = vector.extract_strided_slice %38 {offsets = [80, 0], sizes = [8, 128], strides = [1, 1]} : vector<128x128xf32> to vector<8x128xf32>
    %216 = arith.addf %214, %215 : vector<8x128xf32>
    %217 = vector.extract_strided_slice %41 {offsets = [96, 0], sizes = [8, 128], strides = [1, 1]} : vector<128x128xf32> to vector<8x128xf32>
    %218 = arith.addf %216, %217 : vector<8x128xf32>
    %219 = vector.extract_strided_slice %44 {offsets = [104, 0], sizes = [8, 128], strides = [1, 1]} : vector<128x128xf32> to vector<8x128xf32>
    %220 = arith.addf %218, %219 : vector<8x128xf32>
    %221 = vector.extract_strided_slice %47 {offsets = [112, 0], sizes = [8, 128], strides = [1, 1]} : vector<128x128xf32> to vector<8x128xf32>
    %222 = arith.addf %220, %221 : vector<8x128xf32>
    %223 = vector.extract_strided_slice %32 {offsets = [72, 0], sizes = [8, 128], strides = [1, 1]} : vector<128x128xf32> to vector<8x128xf32>
    %224 = vector.extract_strided_slice %35 {offsets = [80, 0], sizes = [8, 128], strides = [1, 1]} : vector<128x128xf32> to vector<8x128xf32>
    %225 = arith.addf %223, %224 : vector<8x128xf32>
    %226 = vector.extract_strided_slice %38 {offsets = [88, 0], sizes = [8, 128], strides = [1, 1]} : vector<128x128xf32> to vector<8x128xf32>
    %227 = arith.addf %225, %226 : vector<8x128xf32>
    %228 = vector.extract_strided_slice %41 {offsets = [104, 0], sizes = [8, 128], strides = [1, 1]} : vector<128x128xf32> to vector<8x128xf32>
    %229 = arith.addf %227, %228 : vector<8x128xf32>
    %230 = vector.extract_strided_slice %44 {offsets = [112, 0], sizes = [8, 128], strides = [1, 1]} : vector<128x128xf32> to vector<8x128xf32>
    %231 = arith.addf %229, %230 : vector<8x128xf32>
    %232 = vector.extract_strided_slice %47 {offsets = [120, 0], sizes = [8, 128], strides = [1, 1]} : vector<128x128xf32> to vector<8x128xf32>
    %233 = arith.addf %231, %232 : vector<8x128xf32>
    %234 = vector.extract_strided_slice %32 {offsets = [80, 0], sizes = [8, 128], strides = [1, 1]} : vector<128x128xf32> to vector<8x128xf32>
    %235 = vector.extract_strided_slice %35 {offsets = [88, 0], sizes = [8, 128], strides = [1, 1]} : vector<128x128xf32> to vector<8x128xf32>
    %236 = arith.addf %234, %235 : vector<8x128xf32>
    %237 = vector.extract_strided_slice %41 {offsets = [112, 0], sizes = [8, 128], strides = [1, 1]} : vector<128x128xf32> to vector<8x128xf32>
    %238 = arith.addf %236, %237 : vector<8x128xf32>
    %239 = vector.extract_strided_slice %44 {offsets = [120, 0], sizes = [8, 128], strides = [1, 1]} : vector<128x128xf32> to vector<8x128xf32>
    %240 = arith.addf %238, %239 : vector<8x128xf32>
    %241 = tpu.concatenate %63, %74, %85, %92, %103, %120, %137, %148, %159, %176, %193, %204, %211, %222, %233, %240 in 0 : vector<8x128xf32>, vector<8x128xf32>, vector<8x128xf32>, vector<8x128xf32>, vector<8x128xf32>, vector<8x128xf32>, vector<8x128xf32>, vector<8x128xf32>, vector<8x128xf32>, vector<8x128xf32>, vector<8x128xf32>, vector<8x128xf32>, vector<8x128xf32>, vector<8x128xf32>, vector<8x128xf32>, vector<8x128xf32> -> vector<128x128xf32>
    %c0_35 = arith.constant 0 : index
    %c0_36 = arith.constant 0 : index
    %242 = vector.load %arg5[%c0_35, %c0_36] : memref<1x128xf32, #tpu.memory_space<vmem>>, vector<1x128xf32>
    %243 = vector.broadcast %242 : vector<1x128xf32> to vector<128x128xf32>
    %244 = arith.addf %241, %243 : vector<128x128xf32>
    %cst_37 = arith.constant 0.000000e+00 : f32
    %245 = vector.broadcast %cst_37 : f32 to vector<128x128xf32>
    %246 = arith.cmpf oge, %244, %245 : vector<128x128xf32>
    %cst_38 = arith.constant 2.000000e-01 : f32
    %247 = vector.broadcast %cst_38 : f32 to vector<128x128xf32>
    %248 = arith.mulf %247, %244 : vector<128x128xf32>
    %249 = arith.select %246, %244, %248 : vector<128x128xi1>, vector<128x128xf32>
    %250 = arith.mulf %249, %249 : vector<128x128xf32>
    %cst_39 = arith.constant dense<0.000000e+00> : vector<128xf32>
    %251 = vector.multi_reduction <add>, %250, %cst_39 [1] : vector<128x128xf32> to vector<128xf32>
    %252 = vector.shape_cast %251 : vector<128xf32> to vector<128x1xf32>
    %cst_40 = arith.constant 2.500000e-01 : f32
    %253 = vector.broadcast %cst_40 : f32 to vector<128x1xf32>
    %254 = arith.mulf %252, %253 : vector<128x1xf32>
    %cst_41 = arith.constant 9.99999993E-9 : f32
    %255 = vector.broadcast %cst_41 : f32 to vector<128x1xf32>
    %256 = arith.addf %254, %255 : vector<128x1xf32>
    %257 = math.rsqrt %256 : vector<128x1xf32>
    %258 = vector.broadcast %257 : vector<128x1xf32> to vector<128x128xf32>
    %259 = arith.mulf %249, %258 : vector<128x128xf32>
    %c0_42 = arith.constant 0 : index
    %c0_43 = arith.constant 0 : index
    %260 = vector.load %arg6[%c0_42, %c0_43] : memref<128x128xf32, #tpu.memory_space<vmem>>, vector<128x128xf32>
    tpu.vector_store %arg6[%c0_42, %c0_43], %259 {strides = array<i32>} : memref<128x128xf32, #tpu.memory_space<vmem>>, vector<128x128xf32>,
    return
  }
  func.func @transform_0(%arg0: i32) -> (i32, i32) {
    %c0_i32 = arith.constant 0 : i32
    %c0_i32_0 = arith.constant 0 : i32
    return %arg0, %c0_i32 : i32, i32
  }
  func.func @transform_1(%arg0: i32) -> (i32, i32) {
    %c0_i32 = arith.constant 0 : i32
    %c0_i32_0 = arith.constant 0 : i32
    %c0_i32_1 = arith.constant 0 : i32
    return %c0_i32, %c0_i32_0 : i32, i32
  }
  func.func @transform_2(%arg0: i32) -> (i32, i32) {
    %c0_i32 = arith.constant 0 : i32
    %c0_i32_0 = arith.constant 0 : i32
    %c0_i32_1 = arith.constant 0 : i32
    return %c0_i32, %c0_i32_0 : i32, i32
  }
  func.func @transform_3(%arg0: i32) -> (i32, i32, i32) {
    %c0_i32 = arith.constant 0 : i32
    %c0_i32_0 = arith.constant 0 : i32
    %c0_i32_1 = arith.constant 0 : i32
    %c0_i32_2 = arith.constant 0 : i32
    return %c0_i32, %c0_i32_0, %c0_i32_1 : i32, i32, i32
  }
  func.func @transform_4(%arg0: i32) -> (i32, i32) {
    %c0_i32 = arith.constant 0 : i32
    %c0_i32_0 = arith.constant 0 : i32
    %c0_i32_1 = arith.constant 0 : i32
    return %c0_i32, %c0_i32_0 : i32, i32
  }
  func.func @transform_5(%arg0: i32) -> (i32, i32) {
    %c0_i32 = arith.constant 0 : i32
    %c0_i32_0 = arith.constant 0 : i32
    return %arg0, %c0_i32 : i32, i32
  }
}

</mosaic_0001>

<bundles_post_ra>
// kernel: tpu_custom_call.1
= control target key start
LH: loop header
LB: loop body
LE: loop exit
PB: predicated region body
PF: predicated region fallthrough
CT: control target
= control target key end

     0   :  { %10 = vsyncpa [#allocation3], 0  ;;  %s4283_s0 = inlined_call_operand.hbm [shape: f32[8,128], index: 0, kind: input, shape index: {}]   ;;  %s4284_s1 = inlined_call_operand.hbm [shape: bf16[128,2048], index: 1, kind: input, shape index: {}]   ;;  %s4285_s2 = inlined_call_operand.hbm [shape: f32[1,128], index: 2, kind: input, shape index: {}]   ;;  %s4286_s3 = inlined_call_operand.hbm [shape: bf16[9,128,128], index: 3, kind: input, shape index: {}]   ;;  %s4287_s4 = inlined_call_operand.hbm [shape: f32[1,128], index: 4, kind: input, shape index: {}]   ;;  %s4288_s5 = inlined_call_operand.hbm [shape: f32[128,128], index: 5, kind: output, shape index: {}]  }
   0x1   :  { %11 = vsyncpa [#allocation6], 0 }
   0x2   :  { %12 = vsyncpa [#allocation9], 0 }
   0x3   :  { %13 = vsyncpa [#allocation4], 0  ;;  %s3882_s18 = smov [#allocation5]   ;;  %s3742_s22 = scalar_lea.hbm %s4284_s1, 16384 }
   0x4   :  { %s29_s19 = sshll.u32 %s3882_s18, 4  ;;  %p3743_p0 = scmp.ne.s32.totalorder %s4284_s1, %s3742_s22  ;;  %s30_s19 = int_to_ptr.vmem [resolvable:$true] %s29_s19 }
   0x5   :  { %p3746_p1 = scmp.lt.u32.totalorder %s3742_s22, %s4284_s1 }
   0x7   :  { %p3748_p2 = pnand %p3746_p1, %p3743_p0 }
   0x9   :  { %3751 = shalt.err (!%p3748_p2)
}
   0xa   :  { %s3752_s27 = scalar_lea.vmem %s30_s19, 16384  ;;  %p3757_p4 = scmp.lt.s32.totalorder %s30_s19, %s30_s19 }
   0xb   :  { %p3753_p3 = scmp.ne.s32.totalorder %s30_s19, %s3752_s27  ;;  %p3758_p5 = scmp.lt.s32.totalorder %s3752_s27, %s3752_s27 }
   0xd   :  { %p3759_p6 = por %p3758_p5, %p3757_p4 }
   0xf   :  { %p3760_p7 = pnand %p3759_p6, %p3753_p3 }
  0x11   :  { %3763 = shalt.err (!%p3760_p7)
}
  0x12   :  { %s3883_s28 = smov 1024   ;;  %s3884_s29 = smov 64  }
  0x13   :  { %35 = dma.hbm_to_vmem [thread:$0]  %s4284_s1, 16384, %s30_s19, [#allocation6], %s3883_s28, %s3883_s28, %s3884_s29  }
  0x14   :  { %s3885_s7 = smov [#allocation8]   ;;  %s3764_s11 = scalar_lea.hbm %s4286_s3, 9216 }
  0x15   :  { %s51_s8 = sshll.u32 %s3885_s7, 4  ;;  %p3765_p8 = scmp.ne.s32.totalorder %s4286_s3, %s3764_s11  ;;  %s52_s8 = int_to_ptr.vmem [resolvable:$true] %s51_s8 }
  0x16   :  { %p3768_p9 = scmp.lt.u32.totalorder %s3764_s11, %s4286_s3 }
  0x18   :  { %p3770_p10 = pnand %p3768_p9, %p3765_p8 }
  0x1a   :  { %3773 = shalt.err (!%p3770_p10)
}
  0x1b   :  { %s3774_s16 = scalar_lea.vmem %s52_s8, 9216  ;;  %p3779_p12 = scmp.lt.s32.totalorder %s52_s8, %s52_s8 }
  0x1c   :  { %p3775_p11 = scmp.ne.s32.totalorder %s52_s8, %s3774_s16  ;;  %p3780_p13 = scmp.lt.s32.totalorder %s3774_s16, %s3774_s16 }
  0x1e   :  { %p3781_p0 = por %p3780_p13, %p3779_p12 }
  0x20   :  { %p3782_p1 = pnand %p3781_p0, %p3775_p11 }
  0x22   :  { %3785 = shalt.err (!%p3782_p1)
}
  0x23   :  { %s3886_s1 = smov 4   ;;  %s3887_s19 = smov [#allocation2]  }
  0x24   :  { %57 = dma.hbm_to_vmem [thread:$0]  %s4286_s3, 9216, %s52_s8, [#allocation9], %s3884_s29, %s3884_s29, %s3886_s1  }
  0x25   :  { %s20_s20 = sshll.u32 %s3887_s19, 4  ;;  %s3888_s21 = smov [#allocation7]   ;;  %s21_s20 = int_to_ptr.vmem [resolvable:$true] %s20_s20 }
  0x26   :  { %s42_s22 = sshll.u32 %s3888_s21, 4  ;;  %s3786_s25 = scalar_lea.hbm %s4283_s0, 128  ;;  %s43_s22 = int_to_ptr.vmem [resolvable:$true] %s42_s22 }
  0x27   :  { %p3787_p2 = scmp.ne.s32.totalorder %s4283_s0, %s3786_s25  ;;  %p3790_p3 = scmp.lt.u32.totalorder %s3786_s25, %s4283_s0 }
  0x29   :  { %p3792_p4 = pnand %p3790_p3, %p3787_p2 }
  0x2b   :  { %3795 = shalt.err (!%p3792_p4)
}
  0x2c   :  { %s3796_s3 = scalar_lea.vmem %s21_s20, 128  ;;  %p3801_p6 = scmp.lt.s32.totalorder %s21_s20, %s21_s20 }
  0x2d   :  { %p3797_p5 = scmp.ne.s32.totalorder %s21_s20, %s3796_s3  ;;  %p3802_p7 = scmp.lt.s32.totalorder %s3796_s3, %s3796_s3 }
  0x2f   :  { %p3803_p8 = por %p3802_p7, %p3801_p6 }
  0x31   :  { %p3804_p9 = pnand %p3803_p8, %p3797_p5 }
  0x33   :  { %3807 = shalt.err (!%p3804_p9)
}
  0x34   :  { %23 = dma.hbm_to_vmem [thread:$0]  %s4283_s0, 128, %s21_s20, [#allocation3]  }
  0x35   :  { %s3808_s9 = scalar_lea.hbm %s4285_s2, 16 }
  0x36   :  { %p3809_p10 = scmp.ne.s32.totalorder %s4285_s2, %s3808_s9  ;;  %p3812_p11 = scmp.lt.u32.totalorder %s3808_s9, %s4285_s2 }
  0x38   :  { %p3814_p12 = pnand %p3812_p11, %p3809_p10 }
  0x3a   :  { %3817 = shalt.err (!%p3814_p12)
}
  0x3b   :  { %s3818_s14 = scalar_lea.vmem %s43_s22, 16  ;;  %s3822_s15 = scalar_lea.vmem %s43_s22, 32 }
  0x3c   :  { %p3819_p13 = scmp.ne.s32.totalorder %s43_s22, %s3818_s14  ;;  %p3823_p0 = scmp.lt.s32.totalorder %s43_s22, %s43_s22 }
  0x3d   :  { %p3824_p1 = scmp.lt.s32.totalorder %s3822_s15, %s3818_s14 }
  0x3f   :  { %p3825_p2 = por %p3824_p1, %p3823_p0 }
  0x41   :  { %p3826_p3 = pnand %p3825_p2, %p3819_p13 }
  0x43   :  { %3829 = shalt.err (!%p3826_p3)
}
  0x44   :  { %45 = dma.hbm_to_vmem [thread:$0]  %s4285_s2, 16, %s43_s22, [#allocation6]  }
  0x45   :  { %s3889_s1 = smov [#allocation10]   ;;  %s3830_s20 = scalar_lea.hbm %s4287_s4, 16 }
  0x46   :  { %s64_s17 = sshll.u32 %s3889_s1, 4  ;;  %p3831_p4 = scmp.ne.s32.totalorder %s4287_s4, %s3830_s20  ;;  %s65_s17 = int_to_ptr.vmem [resolvable:$true] %s64_s17 }
  0x47   :  { %p3834_p5 = scmp.lt.u32.totalorder %s3830_s20, %s4287_s4 }
  0x49   :  { %p3836_p6 = pnand %p3834_p5, %p3831_p4 }
  0x4b   :  { %3839 = shalt.err (!%p3836_p6)
}
  0x4c   :  { %s3840_s26 = scalar_lea.vmem %s65_s17, 16  ;;  %s3844_s2 = scalar_lea.vmem %s65_s17, 32 }
  0x4d   :  { %p3841_p7 = scmp.ne.s32.totalorder %s65_s17, %s3840_s26  ;;  %p3845_p8 = scmp.lt.s32.totalorder %s65_s17, %s65_s17 }
  0x4e   :  { %p3846_p9 = scmp.lt.s32.totalorder %s3844_s2, %s3840_s26 }
  0x50   :  { %p3847_p10 = por %p3846_p9, %p3845_p8 }
  0x52   :  { %p3848_p11 = pnand %p3847_p10, %p3841_p7 }
  0x54   :  { %3851 = shalt.err (!%p3848_p11)
}
  0x55   :  { %67 = dma.hbm_to_vmem [thread:$0]  %s4287_s4, 16, %s65_s17, [#allocation9]  }
  0x56   :  { %3874 = dma.done.wait [#allocation3], 128  }
  0x57   :  { %3875 = vsyncadd [#allocation3], 4294967168 }
  0x58   :  { %3876 = dma.done.wait [#allocation6], 16400  }
  0x59   :  { %3877 = vsyncadd [#allocation6], 4294950896 }
  0x5a   :  { %3878 = dma.done.wait [#allocation9], 9232  }
  0x5b   :  { %3879 = vsyncadd [#allocation9], 4294958064  ;;  %v3890_v0 = vmov 0   ;;  %v86_v1 = vld [vmem:[#allocation5] sm:$0xff]  ;;  %v87_v3 = vld [vmem:[#allocation5 + $0x8] sm:$0xff]  ;;  %s3891_s4 = smov [#allocation11]  }
  0x5c   :  { %886 = vmatprep.mubr.bf16.mxu0 %v3890_v0  ;;  %927 = vmatprep.mubr.bf16.mxu1 %v3890_v0  ;;  %v94_v2 = vld [vmem:[#allocation5 + $0x40] sm:$0xff]  ;;  %v95_v5 = vld [vmem:[#allocation5 + $0x48] sm:$0xff]  ;;  %v88_v63 = vld [vmem:[#allocation5 + $0x10] sm:$0xff]  ;;  %s2962_s28 = sshll.u32 %s3891_s4, 4  ;;  %s2963_s28 = int_to_ptr.vmem [resolvable:$true] %s2962_s28 }
  0x5d   :  { %v2977_v4 = vcombine.high %v86_v1, %v94_v2  ;;  %v2976_v6 = vcombine.low %v86_v1, %v94_v2  ;;  %v102_v7 = vld [vmem:[#allocation5 + $0x80] sm:$0xff]  ;;  %v2979_v9 = vcombine.high %v87_v3, %v95_v5  ;;  %v2978_v10 = vcombine.low %v87_v3, %v95_v5  ;;  %v103_v12 = vld [vmem:[#allocation5 + $0x88] sm:$0xff]  ;;  %v96_v1 = vld [vmem:[#allocation5 + $0x50] sm:$0xff]  ;;  %s3852_s30 = scalar_lea.vmem %s2963_s28, 2048  ;;  %p3857_p13 = scmp.lt.s32.totalorder %s2963_s28, %s2963_s28 }
  0x5e   :  { %v110_v8 = vld [vmem:[#allocation5 + $0xc0] sm:$0xff]  ;;  %v111_v13 = vld [vmem:[#allocation5 + $0xc8] sm:$0xff]  ;;  %v89_v2 = vld [vmem:[#allocation5 + $0x18] sm:$0xff]  ;;  %p3853_p12 = scmp.ne.s32.totalorder %s2963_s28, %s3852_s30  ;;  %p3858_p0 = scmp.lt.s32.totalorder %s3852_s30, %s3852_s30 }
  0x5f   :  { %v2993_v11 = vcombine.high %v102_v7, %v110_v8  ;;  %v118_v14 = vld [vmem:[#allocation5 + $0x100] sm:$0xff]  ;;  %854 = vmatprep.subr.bf16.mxu0 %v2977_v4  ;;  %v2995_v15 = vcombine.high %v103_v12, %v111_v13  ;;  %v119_v17 = vld [vmem:[#allocation5 + $0x108] sm:$0xff]  ;;  %895 = vmatprep.subr.bf16.mxu1 %v2979_v9  ;;  %v2992_v19 = vcombine.low %v102_v7, %v110_v8  ;;  %v97_v3 = vld [vmem:[#allocation5 + $0x58] sm:$0xff] }
  0x60   :  { %v126_v16 = vld [vmem:[#allocation5 + $0x140] sm:$0xff]  ;;  %v127_v18 = vld [vmem:[#allocation5 + $0x148] sm:$0xff]  ;;  %855 = vmatpush1.bf16.msra.mxu0 %v2976_v6  ;;  %896 = vmatpush1.bf16.msra.mxu1 %v2978_v10  ;;  %v2994_v20 = vcombine.low %v103_v12, %v111_v13  ;;  %v84_v5 = vld [vmem:[#allocation2] sm:$0xff]  ;;  %v2981_v7 = vcombine.high %v88_v63, %v96_v1  ;;  %v2983_v8 = vcombine.high %v89_v2, %v97_v3  ;;  %p3859_p1 = por %p3858_p0, %p3857_p13 }
  0x61   :  { %856 = vmatprep.subr.bf16.mxu0 %v2993_v11  ;;  %v3009_v21 = vcombine.high %v118_v14, %v126_v16  ;;  %897 = vmatprep.subr.bf16.mxu1 %v2995_v15  ;;  %v3011_v22 = vcombine.high %v119_v17, %v127_v18  ;;  %v134_v23 = vld [vmem:[#allocation5 + $0x180] sm:$0xff]  ;;  %v135_v25 = vld [vmem:[#allocation5 + $0x188] sm:$0xff]  ;;  %v3008_v27 = vcombine.low %v118_v14, %v126_v16  ;;  %v104_v9 = vld [vmem:[#allocation5 + $0x90] sm:$0xff] }
  0x62   :  { %v142_v24 = vld [vmem:[#allocation5 + $0x1c0] sm:$0xff]  ;;  %v143_v26 = vld [vmem:[#allocation5 + $0x1c8] sm:$0xff]  ;;  %v3010_v28 = vcombine.low %v119_v17, %v127_v18  ;;  %v112_v10 = vld [vmem:[#allocation5 + $0xd0] sm:$0xff]  ;;  %v3986_v11 = vpack.c.bf16 %v84_v5, %v84_v5  ;;  %v2980_v14 = vcombine.low %v88_v63, %v96_v1  ;;  %v2982_v15 = vcombine.low %v89_v2, %v97_v3  ;;  %p3860_p2 = pnand %p3859_p1, %p3853_p12 }
  0x63   :  { %v3025_v29 = vcombine.high %v134_v23, %v142_v24  ;;  %v3027_v30 = vcombine.high %v135_v25, %v143_v26  ;;  %v150_v31 = vld [vmem:[#allocation5 + $0x200] sm:$0xff]  ;;  %v151_v33 = vld [vmem:[#allocation5 + $0x208] sm:$0xff]  ;;  %v3024_v35 = vcombine.low %v134_v23, %v142_v24  ;;  %v3026_v36 = vcombine.low %v135_v25, %v143_v26  ;;  %v105_v12 = vld [vmem:[#allocation5 + $0x98] sm:$0xff] }
  0x64   :  { %857 = vmatpush1.bf16.msra.mxu0 %v2992_v19  ;;  %898 = vmatpush1.bf16.msra.mxu1 %v2994_v20  ;;  %v158_v32 = vld [vmem:[#allocation5 + $0x240] sm:$0xff]  ;;  %v159_v34 = vld [vmem:[#allocation5 + $0x248] sm:$0xff]  ;;  %v113_v13 = vld [vmem:[#allocation5 + $0xd8] sm:$0xff]  ;;  %v2997_v16 = vcombine.high %v104_v9, %v112_v10 }
  0x65   :  { %858 = vmatprep.subr.bf16.mxu0 %v3009_v21  ;;  %899 = vmatprep.subr.bf16.mxu1 %v3011_v22  ;;  %v3041_v37 = vcombine.high %v150_v31, %v158_v32  ;;  %v3043_v38 = vcombine.high %v151_v33, %v159_v34  ;;  %v166_v39 = vld [vmem:[#allocation5 + $0x280] sm:$0xff]  ;;  %v167_v41 = vld [vmem:[#allocation5 + $0x288] sm:$0xff]  ;;  %v3040_v43 = vcombine.low %v150_v31, %v158_v32  ;;  %v120_v18 = vld [vmem:[#allocation5 + $0x110] sm:$0xff] }
  0x66   :  { %v174_v40 = vld [vmem:[#allocation5 + $0x2c0] sm:$0xff]  ;;  %v175_v42 = vld [vmem:[#allocation5 + $0x2c8] sm:$0xff]  ;;  %v3042_v44 = vcombine.low %v151_v33, %v159_v34  ;;  %v2999_v17 = vcombine.high %v105_v12, %v113_v13  ;;  %v128_v19 = vld [vmem:[#allocation5 + $0x150] sm:$0xff]  ;;  %v2996_v22 = vcombine.low %v104_v9, %v112_v10  ;;  %v2998_v23 = vcombine.low %v105_v12, %v113_v13 }
  0x67   :  { %v3057_v45 = vcombine.high %v166_v39, %v174_v40  ;;  %v3059_v46 = vcombine.high %v167_v41, %v175_v42  ;;  %v182_v47 = vld [vmem:[#allocation5 + $0x300] sm:$0xff]  ;;  %v183_v49 = vld [vmem:[#allocation5 + $0x308] sm:$0xff]  ;;  %v3056_v51 = vcombine.low %v166_v39, %v174_v40  ;;  %v3058_v52 = vcombine.low %v167_v41, %v175_v42  ;;  %v121_v20 = vld [vmem:[#allocation5 + $0x118] sm:$0xff] }
  0x68   :  { %859 = vmatpush1.bf16.msra.mxu0 %v3008_v27  ;;  %900 = vmatpush1.bf16.msra.mxu1 %v3010_v28  ;;  %v190_v48 = vld [vmem:[#allocation5 + $0x340] sm:$0xff]  ;;  %v191_v50 = vld [vmem:[#allocation5 + $0x348] sm:$0xff]  ;;  %v129_v21 = vld [vmem:[#allocation5 + $0x158] sm:$0xff]  ;;  %v3013_v24 = vcombine.high %v120_v18, %v128_v19 }
  0x69   :  { %860 = vmatprep.subr.bf16.mxu0 %v3025_v29  ;;  %901 = vmatprep.subr.bf16.mxu1 %v3027_v30  ;;  %v3073_v53 = vcombine.high %v182_v47, %v190_v48  ;;  %v3075_v54 = vcombine.high %v183_v49, %v191_v50  ;;  %v198_v55 = vld [vmem:[#allocation5 + $0x380] sm:$0xff]  ;;  %v199_v57 = vld [vmem:[#allocation5 + $0x388] sm:$0xff]  ;;  %v3072_v59 = vcombine.low %v182_v47, %v190_v48  ;;  %v136_v26 = vld [vmem:[#allocation5 + $0x190] sm:$0xff] }
  0x6a   :  { %v206_v56 = vld [vmem:[#allocation5 + $0x3c0] sm:$0xff]  ;;  %v207_v58 = vld [vmem:[#allocation5 + $0x3c8] sm:$0xff]  ;;  %v3074_v60 = vcombine.low %v183_v49, %v191_v50  ;;  %v3015_v25 = vcombine.high %v121_v20, %v129_v21  ;;  %v144_v27 = vld [vmem:[#allocation5 + $0x1d0] sm:$0xff]  ;;  %v3012_v30 = vcombine.low %v120_v18, %v128_v19  ;;  %v3014_v31 = vcombine.low %v121_v20, %v129_v21 }
  0x6b   :  { %v3089_v61 = vcombine.high %v198_v55, %v206_v56  ;;  %v3091_v62 = vcombine.high %v199_v57, %v207_v58  ;;  %v3088_v4 = vcombine.low %v198_v55, %v206_v56  ;;  %v3090_v6 = vcombine.low %v199_v57, %v207_v58  ;;  %v137_v28 = vld [vmem:[#allocation5 + $0x198] sm:$0xff]  ;;  %v152_v34 = vld [vmem:[#allocation5 + $0x210] sm:$0xff]  ;;  %v90_v63 = vld [vmem:[#allocation5 + $0x20] sm:$0xff] }
  0x6c   :  { %861 = vmatpush1.bf16.msra.mxu0 %v3024_v35  ;;  %902 = vmatpush1.bf16.msra.mxu1 %v3026_v36  ;;  %v145_v29 = vld [vmem:[#allocation5 + $0x1d8] sm:$0xff]  ;;  %v3029_v32 = vcombine.high %v136_v26, %v144_v27  ;;  %v160_v35 = vld [vmem:[#allocation5 + $0x250] sm:$0xff]  ;;  %v98_v1 = vld [vmem:[#allocation5 + $0x60] sm:$0xff] }
  0x6d   :  { %862 = vmatprep.subr.bf16.mxu0 %v3041_v37  ;;  %903 = vmatprep.subr.bf16.mxu1 %v3043_v38  ;;  %v3031_v33 = vcombine.high %v137_v28, %v145_v29  ;;  %v153_v36 = vld [vmem:[#allocation5 + $0x218] sm:$0xff]  ;;  %v3028_v38 = vcombine.low %v136_v26, %v144_v27  ;;  %v168_v39 = vld [vmem:[#allocation5 + $0x290] sm:$0xff]  ;;  %v3030_v40 = vcombine.low %v137_v28, %v145_v29  ;;  %v99_v5 = vld [vmem:[#allocation5 + $0x68] sm:$0xff] }
  0x6e   :  { %v161_v37 = vld [vmem:[#allocation5 + $0x258] sm:$0xff]  ;;  %v3045_v41 = vcombine.high %v152_v34, %v160_v35  ;;  %v176_v42 = vld [vmem:[#allocation5 + $0x2d0] sm:$0xff]  ;;  %v114_v9 = vld [vmem:[#allocation5 + $0xe0] sm:$0xff]  ;;  %v2985_v12 = vcombine.high %v90_v63, %v98_v1 }
  0x6f   :  { %v184_v47 = vld [vmem:[#allocation5 + $0x310] sm:$0xff]  ;;  %v3046_v48 = vcombine.low %v153_v36, %v161_v37  ;;  %v3061_v49 = vcombine.high %v168_v39, %v176_v42  ;;  %v107_v13 = vld [vmem:[#allocation5 + $0xa8] sm:$0xff]  ;;  %v130_v18 = vld [vmem:[#allocation5 + $0x160] sm:$0xff] }
  0x70   :  { %863 = vmatpush1.bf16.msra.mxu0 %v3040_v43  ;;  %904 = vmatpush1.bf16.msra.mxu1 %v3042_v44  ;;  %v3047_v43 = vcombine.high %v153_v36, %v161_v37  ;;  %v169_v44 = vld [vmem:[#allocation5 + $0x298] sm:$0xff]  ;;  %v192_v50 = vld [vmem:[#allocation5 + $0x350] sm:$0xff]  ;;  %v123_v21 = vld [vmem:[#allocation5 + $0x128] sm:$0xff] }
  0x71   :  { %864 = vmatprep.subr.bf16.mxu0 %v3057_v45  ;;  %905 = vmatprep.subr.bf16.mxu1 %v3059_v46  ;;  %v177_v45 = vld [vmem:[#allocation5 + $0x2d8] sm:$0xff]  ;;  %v3044_v46 = vcombine.low %v152_v34, %v160_v35  ;;  %v200_v55 = vld [vmem:[#allocation5 + $0x390] sm:$0xff]  ;;  %v3077_v58 = vcombine.high %v184_v47, %v192_v50  ;;  %v146_v26 = vld [vmem:[#allocation5 + $0x1e0] sm:$0xff] }
  0x72   :  { %v208_v56 = vld [vmem:[#allocation5 + $0x3d0] sm:$0xff]  ;;  %v3062_v57 = vcombine.low %v169_v44, %v177_v45  ;;  %v139_v29 = vld [vmem:[#allocation5 + $0x1a8] sm:$0xff]  ;;  %v162_v34 = vld [vmem:[#allocation5 + $0x260] sm:$0xff] }
  0x73   :  { %v3093_v3 = vcombine.high %v200_v55, %v208_v56  ;;  %v155_v37 = vld [vmem:[#allocation5 + $0x228] sm:$0xff] }
  0x74   :  { %865 = vmatpush1.bf16.msra.mxu0 %v3056_v51  ;;  %906 = vmatpush1.bf16.msra.mxu1 %v3058_v52  ;;  %v3063_v51 = vcombine.high %v169_v44, %v177_v45  ;;  %v185_v52 = vld [vmem:[#allocation5 + $0x318] sm:$0xff]  ;;  %v171_v45 = vld [vmem:[#allocation5 + $0x2a8] sm:$0xff] }
  0x75   :  { %866 = vmatprep.subr.bf16.mxu0 %v3073_v53  ;;  %907 = vmatprep.subr.bf16.mxu1 %v3075_v54  ;;  %v193_v53 = vld [vmem:[#allocation5 + $0x358] sm:$0xff]  ;;  %v3060_v54 = vcombine.low %v168_v39, %v176_v42  ;;  %v178_v42 = vld [vmem:[#allocation5 + $0x2e0] sm:$0xff] }
  0x76   :  { %v3078_v2 = vcombine.low %v185_v52, %v193_v53 }
  0x78   :  { %867 = vmatpush1.bf16.msra.mxu0 %v3072_v59  ;;  %908 = vmatpush1.bf16.msra.mxu1 %v3074_v60  ;;  %v201_v59 = vld [vmem:[#allocation5 + $0x398] sm:$0xff]  ;;  %v3079_v60 = vcombine.high %v185_v52, %v193_v53  ;;  %v187_v53 = vld [vmem:[#allocation5 + $0x328] sm:$0xff] }
  0x79   :  { %868 = vmatprep.subr.bf16.mxu0 %v3089_v61  ;;  %909 = vmatprep.subr.bf16.mxu1 %v3091_v62  ;;  %v209_v61 = vld [vmem:[#allocation5 + $0x3d8] sm:$0xff]  ;;  %v3076_v62 = vcombine.low %v184_v47, %v192_v50  ;;  %v194_v50 = vld [vmem:[#allocation5 + $0x360] sm:$0xff] }
  0x7a   :  { %v3094_v10 = vcombine.low %v201_v59, %v209_v61 }
  0x7c   :  { %869 = vmatpush1.bf16.msra.mxu0 %v3088_v4  ;;  %910 = vmatpush1.bf16.msra.mxu1 %v3090_v6  ;;  %v91_v4 = vld [vmem:[#allocation5 + $0x28] sm:$0xff]  ;;  %v3095_v6 = vcombine.high %v201_v59, %v209_v61 }
  0x7d   :  { %936 = vmatprep.subr.bf16.mxu0 %v2981_v7  ;;  %977 = vmatprep.subr.bf16.mxu1 %v2983_v8  ;;  %v3092_v7 = vcombine.low %v200_v55, %v208_v56  ;;  %v106_v8 = vld [vmem:[#allocation5 + $0xa0] sm:$0xff]  ;;  %v2986_v19 = vcombine.low %v91_v4, %v99_v5  ;;  %v203_v61 = vld [vmem:[#allocation5 + $0x3a8] sm:$0xff] }
  0x7e   :  { %v3001_v20 = vcombine.high %v106_v8, %v114_v9 }
  0x7f   :  { %887 = vmatmul.mubr.bf16.vlgmr.msra.gmra.mrb[0].mxu0 %v3986_v11  ;;  %928 = vmatmul.mubr.bf16.vlgmr.msra.gmra.mrb[0].mxu1 %v3986_v11 }
  0x80   :  { %937 = vmatpush1.bf16.msra.mxu0 %v2980_v14  ;;  %978 = vmatpush1.bf16.msra.mxu1 %v2982_v15  ;;  %v115_v14 = vld [vmem:[#allocation5 + $0xe8] sm:$0xff]  ;;  %v2987_v15 = vcombine.high %v91_v4, %v99_v5 }
  0x81   :  { %938 = vmatprep.subr.bf16.mxu0 %v2997_v16  ;;  %979 = vmatprep.subr.bf16.mxu1 %v2999_v17  ;;  %v2984_v16 = vcombine.low %v90_v63, %v98_v1  ;;  %v122_v17 = vld [vmem:[#allocation5 + $0x120] sm:$0xff]  ;;  %v3002_v27 = vcombine.low %v107_v13, %v115_v14 }
  0x82   :  { %968 = vmatprep.mubr.bf16.mxu0 %v3890_v0  ;;  %1009 = vmatprep.mubr.bf16.mxu1 %v3890_v0  ;;  %v3017_v28 = vcombine.high %v122_v17, %v130_v18 }
  0x84   :  { %939 = vmatpush1.bf16.msra.mxu0 %v2996_v22  ;;  %980 = vmatpush1.bf16.msra.mxu1 %v2998_v23  ;;  %v131_v22 = vld [vmem:[#allocation5 + $0x168] sm:$0xff]  ;;  %v3003_v23 = vcombine.high %v107_v13, %v115_v14 }
  0x85   :  { %940 = vmatprep.subr.bf16.mxu0 %v3013_v24  ;;  %981 = vmatprep.subr.bf16.mxu1 %v3015_v25  ;;  %v3000_v24 = vcombine.low %v106_v8, %v114_v9  ;;  %v138_v25 = vld [vmem:[#allocation5 + $0x1a0] sm:$0xff]  ;;  %v3018_v35 = vcombine.low %v123_v21, %v131_v22 }
  0x86   :  { %v3033_v36 = vcombine.high %v138_v25, %v146_v26 }
  0x88   :  { %941 = vmatpush1.bf16.msra.mxu0 %v3012_v30  ;;  %982 = vmatpush1.bf16.msra.mxu1 %v3014_v31  ;;  %v147_v30 = vld [vmem:[#allocation5 + $0x1e8] sm:$0xff]  ;;  %v3019_v31 = vcombine.high %v123_v21, %v131_v22  ;;  %v124_v22 = vld [vmem:[#allocation5 + $0x130] sm:$0xff] }
  0x89   :  { %942 = vmatprep.subr.bf16.mxu0 %v3029_v32  ;;  %983 = vmatprep.subr.bf16.mxu1 %v3031_v33  ;;  %v3016_v32 = vcombine.low %v122_v17, %v130_v18  ;;  %v154_v33 = vld [vmem:[#allocation5 + $0x220] sm:$0xff]  ;;  %v3035_v39 = vcombine.high %v139_v29, %v147_v30  ;;  %v117_v17 = vld [vmem:[#allocation5 + $0xf8] sm:$0xff] }
  0x8a   :  { %v3049_v44 = vcombine.high %v154_v33, %v162_v34 }
  0x8c   :  { %943 = vmatpush1.bf16.msra.mxu0 %v3028_v38  ;;  %984 = vmatpush1.bf16.msra.mxu1 %v3030_v40  ;;  %v163_v38 = vld [vmem:[#allocation5 + $0x268] sm:$0xff]  ;;  %v3032_v40 = vcombine.low %v138_v25, %v146_v26  ;;  %v133_v25 = vld [vmem:[#allocation5 + $0x178] sm:$0xff] }
  0x8d   :  { %944 = vmatprep.subr.bf16.mxu0 %v3045_v41  ;;  %985 = vmatprep.subr.bf16.mxu1 %v3047_v43  ;;  %v170_v41 = vld [vmem:[#allocation5 + $0x2a0] sm:$0xff]  ;;  %v3034_v43 = vcombine.low %v139_v29, %v147_v30  ;;  %v3051_v47 = vcombine.high %v155_v37, %v163_v38  ;;  %v140_v30 = vld [vmem:[#allocation5 + $0x1b0] sm:$0xff] }
  0x8e   :  { %v3065_v52 = vcombine.high %v170_v41, %v178_v42  ;;  %v3064_v56 = vcombine.low %v170_v41, %v178_v42  ;;  %v165_v41 = vld [vmem:[#allocation5 + $0x278] sm:$0xff] }
  0x90   :  { %945 = vmatpush1.bf16.msra.mxu0 %v3044_v46  ;;  %986 = vmatpush1.bf16.msra.mxu1 %v3046_v48  ;;  %v179_v46 = vld [vmem:[#allocation5 + $0x2e8] sm:$0xff]  ;;  %v3048_v48 = vcombine.low %v154_v33, %v162_v34  ;;  %v149_v33 = vld [vmem:[#allocation5 + $0x1f8] sm:$0xff] }
  0x91   :  { %946 = vmatprep.subr.bf16.mxu0 %v3061_v49  ;;  %987 = vmatprep.subr.bf16.mxu1 %v3063_v51  ;;  %v186_v49 = vld [vmem:[#allocation5 + $0x320] sm:$0xff]  ;;  %v3050_v51 = vcombine.low %v155_v37, %v163_v38  ;;  %v3067_v55 = vcombine.high %v171_v45, %v179_v46  ;;  %v3066_v59 = vcombine.low %v171_v45, %v179_v46  ;;  %v156_v38 = vld [vmem:[#allocation5 + $0x230] sm:$0xff] }
  0x92   :  { %v3080_v1 = vcombine.low %v186_v49, %v194_v50  ;;  %v172_v45 = vld [vmem:[#allocation5 + $0x2b0] sm:$0xff] }
  0x93   :  { %v180_v46 = vld [vmem:[#allocation5 + $0x2f0] sm:$0xff] }
  0x94   :  { %947 = vmatpush1.bf16.msra.mxu0 %v3060_v54  ;;  %988 = vmatpush1.bf16.msra.mxu1 %v3062_v57  ;;  %v195_v54 = vld [vmem:[#allocation5 + $0x368] sm:$0xff]  ;;  %v202_v57 = vld [vmem:[#allocation5 + $0x3a0] sm:$0xff] }
  0x95   :  { %948 = vmatprep.subr.bf16.mxu0 %v3077_v58  ;;  %989 = vmatprep.subr.bf16.mxu1 %v3079_v60  ;;  %v210_v58 = vld [vmem:[#allocation5 + $0x3e0] sm:$0xff]  ;;  %v3081_v60 = vcombine.high %v186_v49, %v194_v50  ;;  %v3083_v63 = vcombine.high %v187_v53, %v195_v54  ;;  %v3082_v4 = vcombine.low %v187_v53, %v195_v54  ;;  %v188_v53 = vld [vmem:[#allocation5 + $0x330] sm:$0xff] }
  0x96   :  { %v3097_v5 = vcombine.high %v202_v57, %v210_v58  ;;  %v3096_v9 = vcombine.low %v202_v57, %v210_v58  ;;  %v196_v54 = vld [vmem:[#allocation5 + $0x370] sm:$0xff]  ;;  %v3068_v57 = vcombine.low %v172_v45, %v180_v46 }
  0x98   :  { %949 = vmatpush1.bf16.msra.mxu0 %v3076_v62  ;;  %990 = vmatpush1.bf16.msra.mxu1 %v3078_v2  ;;  %v211_v62 = vld [vmem:[#allocation5 + $0x3e8] sm:$0xff]  ;;  %v92_v2 = vld [vmem:[#allocation5 + $0x30] sm:$0xff] }
  0x99   :  { %950 = vmatprep.subr.bf16.mxu0 %v3093_v3  ;;  %991 = vmatprep.subr.bf16.mxu1 %v3095_v6  ;;  %v100_v3 = vld [vmem:[#allocation5 + $0x70] sm:$0xff]  ;;  %v93_v6 = vld [vmem:[#allocation5 + $0x38] sm:$0xff]  ;;  %v3099_v8 = vcombine.high %v203_v61, %v211_v62  ;;  %v3098_v13 = vcombine.low %v203_v61, %v211_v62 }
  0x9a   :  { %v2989_v14 = vcombine.high %v92_v2, %v100_v3  ;;  %v2988_v18 = vcombine.low %v92_v2, %v100_v3  ;;  %v204_v61 = vld [vmem:[#allocation5 + $0x3b0] sm:$0xff]  ;;  %v3084_v2 = vcombine.low %v188_v53, %v196_v54 }
  0x9b   :  { %v212_v62 = vld [vmem:[#allocation5 + $0x3f0] sm:$0xff] }
  0x9c   :  { %951 = vmatpush1.bf16.msra.mxu0 %v3092_v7  ;;  %992 = vmatpush1.bf16.msra.mxu1 %v3094_v10  ;;  %v101_v7 = vld [vmem:[#allocation5 + $0x78] sm:$0xff]  ;;  %v108_v10 = vld [vmem:[#allocation5 + $0xb0] sm:$0xff] }
  0x9d   :  { %1018 = vmatprep.subr.bf16.mxu0 %v2985_v12  ;;  %1059 = vmatprep.subr.bf16.mxu1 %v2987_v15  ;;  %v116_v12 = vld [vmem:[#allocation5 + $0xf0] sm:$0xff]  ;;  %v2991_v15 = vcombine.high %v93_v6, %v101_v7 }
  0x9e   :  { %v3004_v26 = vcombine.low %v108_v10, %v116_v12 }
  0x9f   :  { %969 = vmatmul.mubr.bf16.vlgmr.msra.gmra.mrb[4].mxu0 %v3986_v11  ;;  %1010 = vmatmul.mubr.bf16.vlgmr.msra.gmra.mrb[4].mxu1 %v3986_v11 }
  0xa0   :  { %1019 = vmatpush1.bf16.msra.mxu0 %v2984_v16  ;;  %1060 = vmatpush1.bf16.msra.mxu1 %v2986_v19  ;;  %v109_v16 = vld [vmem:[#allocation5 + $0xb8] sm:$0xff]  ;;  %v2990_v19 = vcombine.low %v93_v6, %v101_v7  ;;  %v3100_v6 = vcombine.low %v204_v61, %v212_v62 }
  0xa1   :  { %1020 = vmatprep.subr.bf16.mxu0 %v3001_v20  ;;  %1061 = vmatprep.subr.bf16.mxu1 %v3003_v23  ;;  %v3005_v20 = vcombine.high %v108_v10, %v116_v12  ;;  %v3007_v21 = vcombine.high %v109_v16, %v117_v17  ;;  %v132_v23 = vld [vmem:[#allocation5 + $0x170] sm:$0xff] }
  0xa2   :  { %1050 = vmatprep.mubr.bf16.mxu0 %v3890_v0  ;;  %1091 = vmatprep.mubr.bf16.mxu1 %v3890_v0  ;;  %v3020_v34 = vcombine.low %v124_v22, %v132_v23  ;;  %v3640_v10 = vld [vmem:[#allocation8 + $0x8] sm:$0xff]  }
  0xa3   :  { %v3641_v12 = vld [vmem:[#allocation8 + $0x48] sm:$0xff]  }
  0xa4   :  { %1021 = vmatpush1.bf16.msra.mxu0 %v3000_v24  ;;  %1062 = vmatpush1.bf16.msra.mxu1 %v3002_v27  ;;  %v125_v24 = vld [vmem:[#allocation5 + $0x138] sm:$0xff]  ;;  %v3006_v27 = vcombine.low %v109_v16, %v117_v17  ;;  %v3646_v17 = vld [vmem:[#allocation8 + $0x20] sm:$0xff]  }
  0xa5   :  { %1022 = vmatprep.subr.bf16.mxu0 %v3017_v28  ;;  %1063 = vmatprep.subr.bf16.mxu1 %v3019_v31  ;;  %v3021_v28 = vcombine.high %v124_v22, %v132_v23  ;;  %v3023_v29 = vcombine.high %v125_v24, %v133_v25  ;;  %v148_v31 = vld [vmem:[#allocation5 + $0x1f0] sm:$0xff]  ;;  %v3645_v16 = vld [vmem:[#allocation8 + $0x58] sm:$0xff]  }
  0xa6   :  { %v3036_v42 = vcombine.low %v140_v30, %v148_v31  ;;  %v3652_v22 = vld [vmem:[#allocation8 + $0x38] sm:$0xff]  }
  0xa7   :  { %v3653_v23 = vld [vmem:[#allocation8 + $0x78] sm:$0xff]  }
  0xa8   :  { %1023 = vmatpush1.bf16.msra.mxu0 %v3016_v32  ;;  %1064 = vmatpush1.bf16.msra.mxu1 %v3018_v35  ;;  %v141_v32 = vld [vmem:[#allocation5 + $0x1b8] sm:$0xff]  ;;  %v3022_v35 = vcombine.low %v125_v24, %v133_v25  ;;  %v3654_v24 = vld [vmem:[#allocation8 + $0xc0] sm:$0xff]  }
  0xa9   :  { %1024 = vmatprep.subr.bf16.mxu0 %v3033_v36  ;;  %1065 = vmatprep.subr.bf16.mxu1 %v3035_v39  ;;  %v3037_v36 = vcombine.high %v140_v30, %v148_v31  ;;  %v3039_v37 = vcombine.high %v141_v32, %v149_v33  ;;  %v164_v39 = vld [vmem:[#allocation5 + $0x270] sm:$0xff]  ;;  %v3655_v25 = vld [vmem:[#allocation8 + $0x80] sm:$0xff]  }
  0xaa   :  { %v3052_v49 = vcombine.low %v156_v38, %v164_v39 }
  0xac   :  { %1025 = vmatpush1.bf16.msra.mxu0 %v3032_v40  ;;  %1066 = vmatpush1.bf16.msra.mxu1 %v3034_v43  ;;  %v157_v40 = vld [vmem:[#allocation5 + $0x238] sm:$0xff]  ;;  %v3038_v43 = vcombine.low %v141_v32, %v149_v33 }
  0xad   :  { %1026 = vmatprep.subr.bf16.mxu0 %v3049_v44  ;;  %1067 = vmatprep.subr.bf16.mxu1 %v3051_v47  ;;  %v3053_v44 = vcombine.high %v156_v38, %v164_v39  ;;  %v173_v47 = vld [vmem:[#allocation5 + $0x2b8] sm:$0xff]  ;;  %v3054_v50 = vcombine.low %v157_v40, %v165_v41 }
  0xb0   :  { %1027 = vmatpush1.bf16.msra.mxu0 %v3048_v48  ;;  %1068 = vmatpush1.bf16.msra.mxu1 %v3050_v51  ;;  %v181_v48 = vld [vmem:[#allocation5 + $0x2f8] sm:$0xff]  ;;  %v3069_v51 = vcombine.high %v172_v45, %v180_v46 }
  0xb1   :  { %1028 = vmatprep.subr.bf16.mxu0 %v3065_v52  ;;  %1069 = vmatprep.subr.bf16.mxu1 %v3067_v55  ;;  %v3071_v52 = vcombine.high %v173_v47, %v181_v48  ;;  %v189_v55 = vld [vmem:[#allocation5 + $0x338] sm:$0xff]  ;;  %v3070_v58 = vcombine.low %v173_v47, %v181_v48  ;;  %v3656_v48 = vld [vmem:[#allocation8 + $0xc8] sm:$0xff]  }
  0xb4   :  { %1029 = vmatpush1.bf16.msra.mxu0 %v3064_v56  ;;  %1070 = vmatpush1.bf16.msra.mxu1 %v3066_v59  ;;  %v197_v56 = vld [vmem:[#allocation5 + $0x378] sm:$0xff]  ;;  %v3085_v59 = vcombine.high %v188_v53, %v196_v54  ;;  %v3662_v54 = vld [vmem:[#allocation8 + $0xe0] sm:$0xff]  }
  0xb5   :  { %1030 = vmatprep.subr.bf16.mxu0 %v3081_v60  ;;  %1071 = vmatprep.subr.bf16.mxu1 %v3083_v63  ;;  %v3087_v60 = vcombine.high %v189_v55, %v197_v56  ;;  %v205_v63 = vld [vmem:[#allocation5 + $0x3b8] sm:$0xff]  ;;  %v3086_v3 = vcombine.low %v189_v55, %v197_v56  ;;  %v3663_v55 = vld [vmem:[#allocation8 + $0xa0] sm:$0xff]   ;;  %v3664_v56 = vld [vmem:[#allocation8 + $0xe8] sm:$0xff]  }
  0xb6   :  { %v3661_v53 = vld [vmem:[#allocation8 + $0x98] sm:$0xff]  }
  0xb8   :  { %1031 = vmatpush1.bf16.msra.mxu0 %v3080_v1  ;;  %1072 = vmatpush1.bf16.msra.mxu1 %v3082_v4  ;;  %v213_v1 = vld [vmem:[#allocation5 + $0x3f8] sm:$0xff]  ;;  %v3101_v4 = vcombine.high %v204_v61, %v212_v62 }
  0xb9   :  { %1032 = vmatprep.subr.bf16.mxu0 %v3097_v5  ;;  %1073 = vmatprep.subr.bf16.mxu1 %v3099_v8  ;;  %v3103_v5 = vcombine.high %v205_v63, %v213_v1  ;;  %v3102_v7 = vcombine.low %v205_v63, %v213_v1  ;;  %v3638_v8 = vld [vmem:[#allocation8] sm:$0xff]   ;;  %v3668_v61 = vld [vmem:[#allocation8 + $0xf8] sm:$0xff]  }
  0xba   :  { %v3669_v62 = vld [vmem:[#allocation8 + $0xb8] sm:$0xff]  }
  0xbc   :  { %1033 = vmatpush1.bf16.msra.mxu0 %v3096_v9  ;;  %1074 = vmatpush1.bf16.msra.mxu1 %v3098_v13  ;;  %v3639_v9 = vld [vmem:[#allocation8 + $0x40] sm:$0xff]   ;;  %v3642_v13 = vld [vmem:[#allocation8 + $0x10] sm:$0xff]  }
  0xbd   :  { %1100 = vmatprep.subr.bf16.mxu0 %v2989_v14  ;;  %1141 = vmatprep.subr.bf16.mxu1 %v2991_v15  ;;  %v3643_v14 = vld [vmem:[#allocation8 + $0x50] sm:$0xff]   ;;  %v3644_v15 = vld [vmem:[#allocation8 + $0x18] sm:$0xff]  }
  0xbf   :  { %1051 = vmatmul.mubr.bf16.vlgmr.msra.gmra.mrb[8].mxu0 %v3986_v11  ;;  %1092 = vmatmul.mubr.bf16.vlgmr.msra.gmra.mrb[8].mxu1 %v3986_v11 }
  0xc0   :  { %1101 = vmatpush1.bf16.msra.mxu0 %v2988_v18  ;;  %1142 = vmatpush1.bf16.msra.mxu1 %v2990_v19  ;;  %v3647_v18 = vld [vmem:[#allocation8 + $0x60] sm:$0xff]   ;;  %v3649_v19 = vld [vmem:[#allocation8 + $0x68] sm:$0xff]  }
  0xc1   :  { %1102 = vmatprep.subr.bf16.mxu0 %v3005_v20  ;;  %1143 = vmatprep.subr.bf16.mxu1 %v3007_v21  ;;  %v3650_v20 = vld [vmem:[#allocation8 + $0x30] sm:$0xff]  }
  0xc2   :  { %1132 = vmatprep.mubr.bf16.mxu0 %v3890_v0  ;;  %1173 = vmatprep.mubr.bf16.mxu1 %v3890_v0  ;;  %v3055_v0 = vcombine.high %v157_v40, %v165_v41  ;;  %v3651_v21 = vld [vmem:[#allocation8 + $0x70] sm:$0xff]  }
  0xc4   :  { %1103 = vmatpush1.bf16.msra.mxu0 %v3004_v26  ;;  %1144 = vmatpush1.bf16.msra.mxu1 %v3006_v27  ;;  %v4002_v26 = vld [vmem:[#allocation7] ss:$0 sm:$0xff] }
  0xc5   :  { %1104 = vmatprep.subr.bf16.mxu0 %v3021_v28  ;;  %1145 = vmatprep.subr.bf16.mxu1 %v3023_v29 }
  0xc8   :  { %1105 = vmatpush1.bf16.msra.mxu0 %v3020_v34  ;;  %1146 = vmatpush1.bf16.msra.mxu1 %v3022_v35 }
  0xc9   :  { %1106 = vmatprep.subr.bf16.mxu0 %v3037_v36  ;;  %1147 = vmatprep.subr.bf16.mxu1 %v3039_v37 }
  0xcc   :  { %1107 = vmatpush1.bf16.msra.mxu0 %v3036_v42  ;;  %1148 = vmatpush1.bf16.msra.mxu1 %v3038_v43 }
  0xcd   :  { %1108 = vmatprep.subr.bf16.mxu0 %v3053_v44  ;;  %1149 = vmatprep.subr.bf16.mxu1 %v3055_v0 }
  0xd0   :  { %1109 = vmatpush1.bf16.msra.mxu0 %v3052_v49  ;;  %1150 = vmatpush1.bf16.msra.mxu1 %v3054_v50  ;;  %v3657_v49 = vld [vmem:[#allocation8 + $0x88] sm:$0xff]   ;;  %v3658_v50 = vld [vmem:[#allocation8 + $0xd0] sm:$0xff]  }
  0xd1   :  { %1110 = vmatprep.subr.bf16.mxu0 %v3069_v51  ;;  %1151 = vmatprep.subr.bf16.mxu1 %v3071_v52  ;;  %v3659_v51 = vld [vmem:[#allocation8 + $0x90] sm:$0xff]   ;;  %v3660_v52 = vld [vmem:[#allocation8 + $0xd8] sm:$0xff]  }
  0xd4   :  { %1111 = vmatpush1.bf16.msra.mxu0 %v3068_v57  ;;  %1152 = vmatpush1.bf16.msra.mxu1 %v3070_v58  ;;  %v3665_v57 = vld [vmem:[#allocation8 + $0xa8] sm:$0xff]   ;;  %v3666_v58 = vld [vmem:[#allocation8 + $0xf0] sm:$0xff]  }
  0xd5   :  { %1112 = vmatprep.subr.bf16.mxu0 %v3085_v59  ;;  %1153 = vmatprep.subr.bf16.mxu1 %v3087_v60  ;;  %v3667_v59 = vld [vmem:[#allocation8 + $0xb0] sm:$0xff]  }
  0xd8   :  { %1113 = vmatpush1.bf16.msra.mxu0 %v3084_v2  ;;  %1154 = vmatpush1.bf16.msra.mxu1 %v3086_v3 }
  0xd9   :  { %1114 = vmatprep.subr.bf16.mxu0 %v3101_v4  ;;  %1155 = vmatprep.subr.bf16.mxu1 %v3103_v5 }
  0xdc   :  { %1115 = vmatpush1.bf16.msra.mxu0 %v3100_v6  ;;  %1156 = vmatpush1.bf16.msra.mxu1 %v3102_v7  ;;  %v4019_v7 = vld [vmem:[#allocation8 + $0x140] sm:$0xff]  }
  0xdd   :  { %3322 = vmatprep.subr.bf16.mxu0 %v3638_v8  ;;  %3354 = vmatprep.subr.bf16.mxu1 %v3639_v9 }
  0xdf   :  { %1133 = vmatmul.mubr.bf16.vlgmr.msra.gmra.mrb[12].mxu0 %v3986_v11  ;;  %1174 = vmatmul.mubr.bf16.vlgmr.msra.gmra.mrb[12].mxu1 %v3986_v11  ;;  %v3648_v11 = vld [vmem:[#allocation8 + $0x28] sm:$0xff]  }
  0xe0   :  { %3323 = vmatpush3.bf16.msra.mxu0 %v3638_v8  ;;  %3355 = vmatpush3.bf16.msra.mxu1 %v3639_v9 }
  0xe1   :  { %3324 = vmatprep.subr.bf16.mxu0 %v3640_v10  ;;  %3356 = vmatprep.subr.bf16.mxu1 %v3641_v12 }
  0xe4   :  { %3325 = vmatpush3.bf16.msra.mxu0 %v3640_v10  ;;  %3357 = vmatpush3.bf16.msra.mxu1 %v3641_v12 }
  0xe5   :  { %3326 = vmatprep.subr.bf16.mxu0 %v3642_v13  ;;  %3358 = vmatprep.subr.bf16.mxu1 %v3643_v14 }
  0xe8   :  { %3327 = vmatpush3.bf16.msra.mxu0 %v3642_v13  ;;  %3359 = vmatpush3.bf16.msra.mxu1 %v3643_v14  ;;  %v4022_v13 = vld [vmem:[#allocation8 + $0x100] sm:$0xff]  }
  0xe9   :  { %3328 = vmatprep.subr.bf16.mxu0 %v3644_v15  ;;  %3360 = vmatprep.subr.bf16.mxu1 %v3645_v16 }
  0xec   :  { %3329 = vmatpush3.bf16.msra.mxu0 %v3644_v15  ;;  %3361 = vmatpush3.bf16.msra.mxu1 %v3645_v16 }
  0xed   :  { %3330 = vmatprep.subr.bf16.mxu0 %v3646_v17  ;;  %3362 = vmatprep.subr.bf16.mxu1 %v3647_v18 }
  0xf0   :  { %3331 = vmatpush3.bf16.msra.mxu0 %v3646_v17  ;;  %3363 = vmatpush3.bf16.msra.mxu1 %v3647_v18 }
  0xf1   :  { %3332 = vmatprep.subr.bf16.mxu0 %v3648_v11  ;;  %3364 = vmatprep.subr.bf16.mxu1 %v3649_v19 }
  0xf4   :  { %3333 = vmatpush3.bf16.msra.mxu0 %v3648_v11  ;;  %3365 = vmatpush3.bf16.msra.mxu1 %v3649_v19 }
  0xf5   :  { %3334 = vmatprep.subr.bf16.mxu0 %v3650_v20  ;;  %3366 = vmatprep.subr.bf16.mxu1 %v3651_v21 }
  0xf8   :  { %3335 = vmatpush3.bf16.msra.mxu0 %v3650_v20  ;;  %3367 = vmatpush3.bf16.msra.mxu1 %v3651_v21 }
  0xf9   :  { %3336 = vmatprep.subr.bf16.mxu0 %v3652_v22  ;;  %3368 = vmatprep.subr.bf16.mxu1 %v3653_v23 }
  0xfc   :  { %3337 = vmatpush3.bf16.msra.mxu0 %v3652_v22  ;;  %3369 = vmatpush3.bf16.msra.mxu1 %v3653_v23 }
  0xfd   :  { %3418 = vmatprep.subr.bf16.mxu1 %v3654_v24  ;;  %3386 = vmatprep.subr.bf16.mxu0 %v3655_v25 }
 0x152   :  { %v888_v27 = vpop.f32.mrb[0].mxu0  ;;  %v929_v29 = vpop.f32.mrb[0].mxu1 }
 0x153   :  { %v1189_v28 = vadd.f32 %v4002_v26, %v888_v27  ;;  %v890_v30 = vpop.f32.mrb[1].mxu0  ;;  %v1191_v31 = vadd.f32 %v4002_v26, %v929_v29  ;;  %v931_v33 = vpop.f32.mrb[1].mxu1 }
 0x154   :  { %v1190_v32 = vadd.f32 %v4002_v26, %v890_v30  ;;  %v892_v34 = vpop.f32.mrb[2].mxu0  ;;  %v1192_v36 = vadd.f32 %v4002_v26, %v931_v33  ;;  %v933_v37 = vpop.f32.mrb[2].mxu1 }
 0x155   :  { %vm1205_vm0 = vcmp.ge.f32.partialorder %v1189_v28, 0.0  ;;  %v1221_v35 = vmul.f32 0.2, %v1189_v28  ;;  %v893_v38 = vpop.f32.mrb[3].mxu0  ;;  %vm1207_vm1 = vcmp.ge.f32.partialorder %v1191_v31, 0.0  ;;  %v934_v43 = vpop.f32.mrb[3].mxu1 }
 0x156   :  { %v1223_v39 = vmul.f32 0.2, %v1191_v31  ;;  %vm1206_vm2 = vcmp.ge.f32.partialorder %v1190_v32, 0.0  ;;  %v1222_v40 = vmul.f32 0.2, %v1190_v32  ;;  %vm1208_vm3 = vcmp.ge.f32.partialorder %v1192_v36, 0.0 }
 0x157   :  { %v1237_v41 = vsel %vm1205_vm0, %v1189_v28, %v1221_v35  ;;  %v1224_v42 = vmul.f32 0.2, %v1192_v36 }
 0x158   :  { %v1239_v44 = vsel %vm1207_vm1, %v1191_v31, %v1223_v39  ;;  %v1238_v0 = vsel %vm1206_vm2, %v1190_v32, %v1222_v40 }
 0x159   :  { %v4008_v45 = vpack.c.bf16 %v1238_v0, %v1237_v41  ;;  %v1240_v46 = vsel %vm1208_vm3, %v1192_v36, %v1224_v42 }
 0x15a   :  { %v4010_v47 = vpack.c.bf16 %v1240_v46, %v1239_v44 }
 0x15b   :  { %3338 = vmatprep.mubr.bf16.mxu0 %v4008_v45  ;;  %3370 = vmatprep.mubr.bf16.mxu1 %v4008_v45 }
 0x15c   :  { %3339 = vmatmul.mubr.bf16.vlgmr.msra.gmra.mrb[16].mxu0 %v4010_v47  ;;  %3371 = vmatmul.mubr.bf16.vlgmr.msra.gmra.mrb[16].mxu1 %v4010_v47 }
 0x15d   :  { %3419 = vmatpush3.bf16.msra.mxu1 %v3654_v24  ;;  %3387 = vmatpush3.bf16.msra.mxu0 %v3655_v25 }
 0x15e   :  { %3420 = vmatprep.subr.bf16.mxu1 %v3656_v48  ;;  %3388 = vmatprep.subr.bf16.mxu0 %v3657_v49 }
 0x161   :  { %3421 = vmatpush3.bf16.msra.mxu1 %v3656_v48  ;;  %3389 = vmatpush3.bf16.msra.mxu0 %v3657_v49 }
 0x162   :  { %3422 = vmatprep.subr.bf16.mxu1 %v3658_v50  ;;  %3390 = vmatprep.subr.bf16.mxu0 %v3659_v51 }
 0x165   :  { %3423 = vmatpush3.bf16.msra.mxu1 %v3658_v50  ;;  %3391 = vmatpush3.bf16.msra.mxu0 %v3659_v51 }
 0x166   :  { %3424 = vmatprep.subr.bf16.mxu1 %v3660_v52  ;;  %3392 = vmatprep.subr.bf16.mxu0 %v3661_v53 }
 0x169   :  { %3425 = vmatpush3.bf16.msra.mxu1 %v3660_v52  ;;  %3393 = vmatpush3.bf16.msra.mxu0 %v3661_v53 }
 0x16a   :  { %3426 = vmatprep.subr.bf16.mxu1 %v3662_v54  ;;  %3394 = vmatprep.subr.bf16.mxu0 %v3663_v55 }
 0x16d   :  { %3427 = vmatpush3.bf16.msra.mxu1 %v3662_v54  ;;  %3395 = vmatpush3.bf16.msra.mxu0 %v3663_v55 }
 0x16e   :  { %3428 = vmatprep.subr.bf16.mxu1 %v3664_v56  ;;  %3396 = vmatprep.subr.bf16.mxu0 %v3665_v57 }
 0x171   :  { %3429 = vmatpush3.bf16.msra.mxu1 %v3664_v56  ;;  %3397 = vmatpush3.bf16.msra.mxu0 %v3665_v57 }
 0x172   :  { %v970_v60 = vpop.f32.mrb[4].mxu0  ;;  %3430 = vmatprep.subr.bf16.mxu1 %v3666_v58  ;;  %3398 = vmatprep.subr.bf16.mxu0 %v3667_v59  ;;  %v1011_v1 = vpop.f32.mrb[4].mxu1 }
 0x173   :  { %v1193_v63 = vadd.f32 %v4002_v26, %v970_v60  ;;  %v972_v2 = vpop.f32.mrb[5].mxu0  ;;  %v1195_v3 = vadd.f32 %v4002_v26, %v1011_v1  ;;  %v1013_v5 = vpop.f32.mrb[5].mxu1 }
 0x174   :  { %v1194_v4 = vadd.f32 %v4002_v26, %v972_v2  ;;  %v974_v6 = vpop.f32.mrb[6].mxu0  ;;  %v1196_v9 = vadd.f32 %v4002_v26, %v1013_v5  ;;  %v1015_v10 = vpop.f32.mrb[6].mxu1 }
 0x175   :  { %vm1209_vm4 = vcmp.ge.f32.partialorder %v1193_v63, 0.0  ;;  %v1225_v8 = vmul.f32 0.2, %v1193_v63  ;;  %v975_v12 = vpop.f32.mrb[7].mxu0  ;;  %3431 = vmatpush3.bf16.msra.mxu1 %v3666_v58  ;;  %3399 = vmatpush3.bf16.msra.mxu0 %v3667_v59  ;;  %vm1211_vm5 = vcmp.ge.f32.partialorder %v1195_v3, 0.0  ;;  %v1016_v18 = vpop.f32.mrb[7].mxu1 }
 0x176   :  { %v1227_v14 = vmul.f32 0.2, %v1195_v3  ;;  %vm1210_vm6 = vcmp.ge.f32.partialorder %v1194_v4, 0.0  ;;  %v1226_v15 = vmul.f32 0.2, %v1194_v4  ;;  %3432 = vmatprep.subr.bf16.mxu1 %v3668_v61  ;;  %3400 = vmatprep.subr.bf16.mxu0 %v3669_v62  ;;  %vm1212_vm7 = vcmp.ge.f32.partialorder %v1196_v9, 0.0 }
 0x177   :  { %v1241_v16 = vsel %vm1209_vm4, %v1193_v63, %v1225_v8  ;;  %v1228_v17 = vmul.f32 0.2, %v1196_v9  ;;  %v3673_v6 = vld [vmem:[#allocation8 + $0x108] sm:$0xff]   ;;  %v3674_v8 = vld [vmem:[#allocation8 + $0x150] sm:$0xff]   ;;  %v3676_v10 = vld [vmem:[#allocation8 + $0x158] sm:$0xff]  }
 0x178   :  { %v1243_v11 = vsel %vm1211_vm5, %v1195_v3, %v1227_v14  ;;  %v1242_v19 = vsel %vm1210_vm6, %v1194_v4, %v1226_v15  ;;  %v3677_v12 = vld [vmem:[#allocation8 + $0x118] sm:$0xff]   ;;  %v3680_v14 = vld [vmem:[#allocation8 + $0x168] sm:$0xff]  }
 0x179   :  { %v4024_v20 = vpack.c.bf16 %v1242_v19, %v1241_v16  ;;  %v1244_v21 = vsel %vm1212_vm7, %v1196_v9, %v1228_v17  ;;  %3433 = vmatpush3.bf16.msra.mxu1 %v3668_v61  ;;  %3401 = vmatpush3.bf16.msra.mxu0 %v3669_v62  ;;  %v3675_v9 = vld [vmem:[#allocation8 + $0x110] sm:$0xff]   ;;  %v3681_v15 = vld [vmem:[#allocation8 + $0x128] sm:$0xff]   ;;  %v3684_v18 = vld [vmem:[#allocation8 + $0x178] sm:$0xff]  }
 0x17a   :  { %v4026_v22 = vpack.c.bf16 %v1244_v21, %v1243_v11  ;;  %3482 = vmatprep.subr.bf16.mxu1 %v4019_v7  ;;  %3450 = vmatprep.subr.bf16.mxu0 %v4022_v13  ;;  %v3682_v16 = vld [vmem:[#allocation8 + $0x170] sm:$0xff]   ;;  %v3685_v11 = vld [vmem:[#allocation8 + $0x138] sm:$0xff]   ;;  %v3686_v19 = vld [vmem:[#allocation8 + $0x1c0] sm:$0xff]  }
 0x17b   :  { %3342 = vmatprep.mubr.bf16.mxu0 %v4024_v20  ;;  %3374 = vmatprep.mubr.bf16.mxu1 %v4024_v20  ;;  %v3683_v17 = vld [vmem:[#allocation8 + $0x130] sm:$0xff]   ;;  %v3687_v21 = vld [vmem:[#allocation8 + $0x180] sm:$0xff]  }
 0x17c   :  { %3343 = vmatmul.mubr.bf16.gmra.mrb[20].mxu0 %v4026_v22  ;;  %3375 = vmatmul.mubr.bf16.gmra.mrb[20].mxu1 %v4026_v22 }
 0x192   :  { %v1052_v23 = vpop.f32.mrb[8].mxu0  ;;  %v1093_v25 = vpop.f32.mrb[8].mxu1 }
 0x193   :  { %v1197_v24 = vadd.f32 %v4002_v26, %v1052_v23  ;;  %v1054_v27 = vpop.f32.mrb[9].mxu0  ;;  %v1199_v28 = vadd.f32 %v4002_v26, %v1093_v25  ;;  %v1095_v30 = vpop.f32.mrb[9].mxu1  ;;  %v3688_v23 = vld [vmem:[#allocation8 + $0x1c8] sm:$0xff]   ;;  %v3690_v25 = vld [vmem:[#allocation8 + $0x1d0] sm:$0xff]  }
 0x194   :  { %v1198_v29 = vadd.f32 %v4002_v26, %v1054_v27  ;;  %v1056_v31 = vpop.f32.mrb[10].mxu0  ;;  %v1200_v33 = vadd.f32 %v4002_v26, %v1095_v30  ;;  %v1097_v34 = vpop.f32.mrb[10].mxu1  ;;  %v3691_v27 = vld [vmem:[#allocation8 + $0x190] sm:$0xff]   ;;  %v3694_v30 = vld [vmem:[#allocation8 + $0x1e0] sm:$0xff]  }
 0x195   :  { %vm1213_vm8 = vcmp.ge.f32.partialorder %v1197_v24, 0.0  ;;  %v1229_v32 = vmul.f32 0.2, %v1197_v24  ;;  %v1057_v35 = vpop.f32.mrb[11].mxu0  ;;  %vm1215_vm9 = vcmp.ge.f32.partialorder %v1199_v28, 0.0  ;;  %v1098_v40 = vpop.f32.mrb[11].mxu1 }
 0x196   :  { %v1231_v36 = vmul.f32 0.2, %v1199_v28  ;;  %vm1214_vm10 = vcmp.ge.f32.partialorder %v1198_v29, 0.0  ;;  %v1230_v37 = vmul.f32 0.2, %v1198_v29  ;;  %vm1216_vm11 = vcmp.ge.f32.partialorder %v1200_v33, 0.0 }
 0x197   :  { %v1245_v38 = vsel %vm1213_vm8, %v1197_v24, %v1229_v32  ;;  %v1232_v39 = vmul.f32 0.2, %v1200_v33  ;;  %v3689_v24 = vld [vmem:[#allocation8 + $0x188] sm:$0xff]   ;;  %v3695_v31 = vld [vmem:[#allocation8 + $0x1a0] sm:$0xff]   ;;  %v3698_v34 = vld [vmem:[#allocation8 + $0x1f0] sm:$0xff]  }
 0x198   :  { %v1247_v41 = vsel %vm1215_vm9, %v1199_v28, %v1231_v36  ;;  %v1246_v42 = vsel %vm1214_vm10, %v1198_v29, %v1230_v37  ;;  %v3692_v28 = vld [vmem:[#allocation8 + $0x1d8] sm:$0xff]   ;;  %v3696_v32 = vld [vmem:[#allocation8 + $0x1e8] sm:$0xff]   ;;  %v3699_v35 = vld [vmem:[#allocation8 + $0x1b0] sm:$0xff]  }
 0x199   :  { %v4038_v43 = vpack.c.bf16 %v1246_v42, %v1245_v38  ;;  %v1248_v44 = vsel %vm1216_vm11, %v1200_v33, %v1232_v39  ;;  %v3693_v29 = vld [vmem:[#allocation8 + $0x198] sm:$0xff]   ;;  %v3697_v33 = vld [vmem:[#allocation8 + $0x1a8] sm:$0xff]   ;;  %v3702_v38 = vld [vmem:[#allocation8 + $0x200] sm:$0xff]  }
 0x19a   :  { %v4040_v0 = vpack.c.bf16 %v1248_v44, %v1247_v41  ;;  %v3700_v36 = vld [vmem:[#allocation8 + $0x1f8] sm:$0xff]   ;;  %v3703_v39 = vld [vmem:[#allocation8 + $0x208] sm:$0xff]   ;;  %v3704_v40 = vld [vmem:[#allocation8 + $0x210] sm:$0xff]  }
 0x19b   :  { %3346 = vmatprep.mubr.bf16.mxu0 %v4038_v43  ;;  %3378 = vmatprep.mubr.bf16.mxu1 %v4038_v43  ;;  %v3701_v37 = vld [vmem:[#allocation8 + $0x1b8] sm:$0xff]   ;;  %v3706_v42 = vld [vmem:[#allocation8 + $0x220] sm:$0xff]   ;;  %v3707_v44 = vld [vmem:[#allocation8 + $0x228] sm:$0xff]  }
 0x19c   :  { %3347 = vmatmul.mubr.bf16.gmra.mrb[24].mxu0 %v4040_v0  ;;  %3379 = vmatmul.mubr.bf16.gmra.mrb[24].mxu1 %v4040_v0  ;;  %v3705_v41 = vld [vmem:[#allocation8 + $0x218] sm:$0xff]  }
 0x1b2   :  { %v1134_v46 = vpop.f32.mrb[12].mxu0  ;;  %v1175_v49 = vpop.f32.mrb[12].mxu1 }
 0x1b3   :  { %v1201_v48 = vadd.f32 %v4002_v26, %v1134_v46  ;;  %v1136_v50 = vpop.f32.mrb[13].mxu0  ;;  %v1203_v51 = vadd.f32 %v4002_v26, %v1175_v49  ;;  %v1177_v53 = vpop.f32.mrb[13].mxu1  ;;  %v3708_v46 = vld [vmem:[#allocation8 + $0x230] sm:$0xff]  }
 0x1b4   :  { %v1202_v52 = vadd.f32 %v4002_v26, %v1136_v50  ;;  %v1138_v54 = vpop.f32.mrb[14].mxu0  ;;  %v1204_v56 = vadd.f32 %v4002_v26, %v1177_v53  ;;  %v1179_v57 = vpop.f32.mrb[14].mxu1  ;;  %v3672_v26 = vld [vmem:[#allocation8 + $0x148] sm:$0xff]  }
 0x1b5   :  { %vm1217_vm12 = vcmp.ge.f32.partialorder %v1201_v48, 0.0  ;;  %v1233_v55 = vmul.f32 0.2, %v1201_v48  ;;  %v1139_v58 = vpop.f32.mrb[15].mxu0  ;;  %vm1219_vm13 = vcmp.ge.f32.partialorder %v1203_v51, 0.0  ;;  %v1180_v63 = vpop.f32.mrb[15].mxu1 }
 0x1b6   :  { %v1235_v59 = vmul.f32 0.2, %v1203_v51  ;;  %vm1218_vm14 = vcmp.ge.f32.partialorder %v1202_v52, 0.0  ;;  %v1234_v60 = vmul.f32 0.2, %v1202_v52  ;;  %vm1220_vm15 = vcmp.ge.f32.partialorder %v1204_v56, 0.0 }
 0x1b7   :  { %v1249_v61 = vsel %vm1217_vm12, %v1201_v48, %v1233_v55  ;;  %v1236_v62 = vmul.f32 0.2, %v1204_v56  ;;  %v3709_v48 = vld [vmem:[#allocation8 + $0x238] sm:$0xff]  }
 0x1b8   :  { %v1251_v1 = vsel %vm1219_vm13, %v1203_v51, %v1235_v59  ;;  %v1250_v2 = vsel %vm1218_vm14, %v1202_v52, %v1234_v60 }
 0x1b9   :  { %v4050_v3 = vpack.c.bf16 %v1250_v2, %v1249_v61  ;;  %v1252_v4 = vsel %vm1220_vm15, %v1204_v56, %v1236_v62 }
 0x1ba   :  { %v4052_v5 = vpack.c.bf16 %v1252_v4, %v1251_v1 }
 0x1bb   :  { %3350 = vmatprep.mubr.bf16.mxu0 %v4050_v3  ;;  %3382 = vmatprep.mubr.bf16.mxu1 %v4050_v3 }
 0x1bc   :  { %3351 = vmatmul.mubr.bf16.gmra.mrb[28].mxu0 %v4052_v5  ;;  %3383 = vmatmul.mubr.bf16.gmra.mrb[28].mxu1 %v4052_v5 }
 0x1bd   :  { %3402 = vmatprep.mubr.bf16.mxu0 %v4008_v45  ;;  %3434 = vmatprep.mubr.bf16.mxu1 %v4008_v45 }
 0x1c4   :  { %3403 = vmatmul.mubr.bf16.vlgmr.msra.gmra.mrb[32].mxu0 %v4010_v47  ;;  %3435 = vmatmul.mubr.bf16.vlgmr.msra.gmra.mrb[32].mxu1 %v4010_v47 }
 0x1c5   :  { %3483 = vmatpush3.bf16.msra.mxu1 %v4019_v7  ;;  %3406 = vmatprep.mubr.bf16.mxu0 %v4024_v20  ;;  %v3678_v7 = vld [vmem:[#allocation8 + $0x160] sm:$0xff]  }
 0x1c6   :  { %3438 = vmatprep.mubr.bf16.mxu1 %v4024_v20  ;;  %3451 = vmatpush3.bf16.msra.mxu0 %v4022_v13  ;;  %v3679_v13 = vld [vmem:[#allocation8 + $0x120] sm:$0xff]  }
 0x1c7   :  { %3484 = vmatprep.subr.bf16.mxu1 %v3672_v26  ;;  %3452 = vmatprep.subr.bf16.mxu0 %v3673_v6 }
 0x1c9   :  { %3485 = vmatpush3.bf16.msra.mxu1 %v3672_v26 }
 0x1ca   :  { %3453 = vmatpush3.bf16.msra.mxu0 %v3673_v6  ;;  %3486 = vmatprep.subr.bf16.mxu1 %v3674_v8 }
 0x1cb   :  { %3454 = vmatprep.subr.bf16.mxu0 %v3675_v9 }
 0x1cc   :  { %3407 = vmatmul.mubr.bf16.gmra.mrb[36].mxu0 %v4026_v22  ;;  %3439 = vmatmul.mubr.bf16.gmra.mrb[36].mxu1 %v4026_v22 }
 0x1cd   :  { %3487 = vmatpush3.bf16.msra.mxu1 %v3674_v8  ;;  %3410 = vmatprep.mubr.bf16.mxu0 %v4038_v43 }
 0x1ce   :  { %3442 = vmatprep.mubr.bf16.mxu1 %v4038_v43  ;;  %3455 = vmatpush3.bf16.msra.mxu0 %v3675_v9 }
 0x1cf   :  { %3488 = vmatprep.subr.bf16.mxu1 %v3676_v10  ;;  %3456 = vmatprep.subr.bf16.mxu0 %v3677_v12 }
 0x1d1   :  { %3489 = vmatpush3.bf16.msra.mxu1 %v3676_v10 }
 0x1d2   :  { %3457 = vmatpush3.bf16.msra.mxu0 %v3677_v12  ;;  %3490 = vmatprep.subr.bf16.mxu1 %v3678_v7 }
 0x1d3   :  { %3458 = vmatprep.subr.bf16.mxu0 %v3679_v13 }
 0x1d4   :  { %3411 = vmatmul.mubr.bf16.gmra.mrb[40].mxu0 %v4040_v0  ;;  %3443 = vmatmul.mubr.bf16.gmra.mrb[40].mxu1 %v4040_v0 }
 0x1d5   :  { %3491 = vmatpush3.bf16.msra.mxu1 %v3678_v7  ;;  %3414 = vmatprep.mubr.bf16.mxu0 %v4050_v3 }
 0x1d6   :  { %3446 = vmatprep.mubr.bf16.mxu1 %v4050_v3  ;;  %3459 = vmatpush3.bf16.msra.mxu0 %v3679_v13 }
 0x1d7   :  { %3492 = vmatprep.subr.bf16.mxu1 %v3680_v14  ;;  %3460 = vmatprep.subr.bf16.mxu0 %v3681_v15 }
 0x1d9   :  { %3493 = vmatpush3.bf16.msra.mxu1 %v3680_v14 }
 0x1da   :  { %3461 = vmatpush3.bf16.msra.mxu0 %v3681_v15  ;;  %3494 = vmatprep.subr.bf16.mxu1 %v3682_v16 }
 0x1db   :  { %3462 = vmatprep.subr.bf16.mxu0 %v3683_v17 }
 0x1dc   :  { %3415 = vmatmul.mubr.bf16.gmra.mrb[44].mxu0 %v4052_v5  ;;  %3447 = vmatmul.mubr.bf16.gmra.mrb[44].mxu1 %v4052_v5 }
 0x1dd   :  { %3495 = vmatpush3.bf16.msra.mxu1 %v3682_v16  ;;  %3466 = vmatprep.mubr.bf16.mxu0 %v4008_v45 }
 0x1de   :  { %3463 = vmatpush3.bf16.msra.mxu0 %v3683_v17  ;;  %3498 = vmatprep.mubr.bf16.mxu1 %v4008_v45 }
 0x1df   :  { %3496 = vmatprep.subr.bf16.mxu1 %v3684_v18  ;;  %3464 = vmatprep.subr.bf16.mxu0 %v3685_v11 }
 0x1e1   :  { %3497 = vmatpush3.bf16.msra.mxu1 %v3684_v18 }
 0x1e2   :  { %3465 = vmatpush3.bf16.msra.mxu0 %v3685_v11  ;;  %3546 = vmatprep.subr.bf16.mxu1 %v3686_v19 }
 0x1e3   :  { %3514 = vmatprep.subr.bf16.mxu0 %v3687_v21 }
 0x1e4   :  { %3499 = vmatmul.mubr.bf16.vlgmr.msra.gmra.mrb[48].mxu1 %v4010_v47 }
 0x1e5   :  { %3467 = vmatmul.mubr.bf16.vlgmr.msra.gmra.mrb[48].mxu0 %v4010_v47  ;;  %3547 = vmatpush3.bf16.msra.mxu1 %v3686_v19 }
 0x1e6   :  { %3470 = vmatprep.mubr.bf16.mxu0 %v4024_v20  ;;  %3502 = vmatprep.mubr.bf16.mxu1 %v4024_v20 }
 0x1e7   :  { %3515 = vmatpush3.bf16.msra.mxu0 %v3687_v21  ;;  %3548 = vmatprep.subr.bf16.mxu1 %v3688_v23 }
 0x1e8   :  { %3516 = vmatprep.subr.bf16.mxu0 %v3689_v24 }
 0x1e9   :  { %3549 = vmatpush3.bf16.msra.mxu1 %v3688_v23 }
 0x1ea   :  { %3550 = vmatprep.subr.bf16.mxu1 %v3690_v25 }
 0x1eb   :  { %3517 = vmatpush3.bf16.msra.mxu0 %v3689_v24 }
 0x1ec   :  { %3503 = vmatmul.mubr.bf16.gmra.mrb[52].mxu1 %v4026_v22  ;;  %3518 = vmatprep.subr.bf16.mxu0 %v3691_v27 }
 0x1ed   :  { %3471 = vmatmul.mubr.bf16.gmra.mrb[52].mxu0 %v4026_v22  ;;  %3551 = vmatpush3.bf16.msra.mxu1 %v3690_v25 }
 0x1ee   :  { %3474 = vmatprep.mubr.bf16.mxu0 %v4038_v43  ;;  %3506 = vmatprep.mubr.bf16.mxu1 %v4038_v43 }
 0x1ef   :  { %3519 = vmatpush3.bf16.msra.mxu0 %v3691_v27  ;;  %3552 = vmatprep.subr.bf16.mxu1 %v3692_v28 }
 0x1f0   :  { %3520 = vmatprep.subr.bf16.mxu0 %v3693_v29 }
 0x1f1   :  { %3553 = vmatpush3.bf16.msra.mxu1 %v3692_v28 }
 0x1f2   :  { %3554 = vmatprep.subr.bf16.mxu1 %v3694_v30 }
 0x1f3   :  { %3521 = vmatpush3.bf16.msra.mxu0 %v3693_v29 }
 0x1f4   :  { %3507 = vmatmul.mubr.bf16.gmra.mrb[56].mxu1 %v4040_v0  ;;  %3522 = vmatprep.subr.bf16.mxu0 %v3695_v31 }
 0x1f5   :  { %3475 = vmatmul.mubr.bf16.gmra.mrb[56].mxu0 %v4040_v0  ;;  %3555 = vmatpush3.bf16.msra.mxu1 %v3694_v30 }
 0x1f6   :  { %3478 = vmatprep.mubr.bf16.mxu0 %v4050_v3  ;;  %3510 = vmatprep.mubr.bf16.mxu1 %v4050_v3 }
 0x1f7   :  { %3523 = vmatpush3.bf16.msra.mxu0 %v3695_v31  ;;  %3556 = vmatprep.subr.bf16.mxu1 %v3696_v32 }
 0x1f8   :  { %3524 = vmatprep.subr.bf16.mxu0 %v3697_v33 }
 0x1f9   :  { %3557 = vmatpush3.bf16.msra.mxu1 %v3696_v32 }
 0x1fa   :  { %3558 = vmatprep.subr.bf16.mxu1 %v3698_v34 }
 0x1fb   :  { %3525 = vmatpush3.bf16.msra.mxu0 %v3697_v33 }
 0x1fc   :  { %3511 = vmatmul.mubr.bf16.gmra.mrb[60].mxu1 %v4052_v5  ;;  %3526 = vmatprep.subr.bf16.mxu0 %v3699_v35 }
 0x1fd   :  { %3479 = vmatmul.mubr.bf16.gmra.mrb[60].mxu0 %v4052_v5  ;;  %3559 = vmatpush3.bf16.msra.mxu1 %v3698_v34 }
 0x1fe   :  { %3530 = vmatprep.mubr.bf16.mxu0 %v4008_v45  ;;  %3562 = vmatprep.mubr.bf16.mxu1 %v4008_v45 }
 0x1ff   :  { %3527 = vmatpush3.bf16.msra.mxu0 %v3699_v35  ;;  %3560 = vmatprep.subr.bf16.mxu1 %v3700_v36 }
 0x200   :  { %3528 = vmatprep.subr.bf16.mxu0 %v3701_v37 }
 0x201   :  { %3561 = vmatpush3.bf16.msra.mxu1 %v3700_v36 }
 0x202   :  { %3610 = vmatprep.subr.bf16.mxu1 %v3702_v38 }
 0x203   :  { %3529 = vmatpush3.bf16.msra.mxu0 %v3701_v37 }
 0x204   :  { %3563 = vmatmul.mubr.bf16.vlgmr.msra.gmra.mrb[64].mxu1 %v4010_v47  ;;  %3578 = vmatprep.subr.bf16.mxu0 %v3702_v38 }
 0x205   :  { %3618 = vmatpush3.bf16.msra.mxu1 %v3702_v38  ;;  %3566 = vmatprep.mubr.bf16.mxu1 %v4024_v20 }
 0x206   :  { %3531 = vmatmul.mubr.bf16.vlgmr.msra.gmra.mrb[64].mxu0 %v4010_v47  ;;  %3611 = vmatprep.subr.bf16.mxu1 %v3703_v39 }
 0x207   :  { %3534 = vmatprep.mubr.bf16.mxu0 %v4024_v20  ;;  %3579 = vmatpush3.bf16.msra.mxu0 %v3702_v38 }
 0x208   :  { %3580 = vmatprep.subr.bf16.mxu0 %v3703_v39 }
 0x209   :  { %3619 = vmatpush3.bf16.msra.mxu1 %v3703_v39 }
 0x20a   :  { %3612 = vmatprep.subr.bf16.mxu1 %v3704_v40 }
 0x20b   :  { %3581 = vmatpush3.bf16.msra.mxu0 %v3703_v39 }
 0x20c   :  { %3567 = vmatmul.mubr.bf16.gmra.mrb[68].mxu1 %v4026_v22  ;;  %3582 = vmatprep.subr.bf16.mxu0 %v3704_v40 }
 0x20d   :  { %3620 = vmatpush3.bf16.msra.mxu1 %v3704_v40  ;;  %3570 = vmatprep.mubr.bf16.mxu1 %v4038_v43 }
 0x20e   :  { %3535 = vmatmul.mubr.bf16.gmra.mrb[68].mxu0 %v4026_v22  ;;  %3613 = vmatprep.subr.bf16.mxu1 %v3705_v41 }
 0x20f   :  { %3538 = vmatprep.mubr.bf16.mxu0 %v4038_v43  ;;  %3583 = vmatpush3.bf16.msra.mxu0 %v3704_v40 }
 0x210   :  { %3584 = vmatprep.subr.bf16.mxu0 %v3705_v41 }
 0x211   :  { %3621 = vmatpush3.bf16.msra.mxu1 %v3705_v41 }
 0x212   :  { %3614 = vmatprep.subr.bf16.mxu1 %v3706_v42 }
 0x213   :  { %3585 = vmatpush3.bf16.msra.mxu0 %v3705_v41 }
 0x214   :  { %3571 = vmatmul.mubr.bf16.gmra.mrb[72].mxu1 %v4040_v0  ;;  %3586 = vmatprep.subr.bf16.mxu0 %v3706_v42 }
 0x215   :  { %3622 = vmatpush3.bf16.msra.mxu1 %v3706_v42  ;;  %3574 = vmatprep.mubr.bf16.mxu1 %v4050_v3 }
 0x216   :  { %3539 = vmatmul.mubr.bf16.gmra.mrb[72].mxu0 %v4040_v0  ;;  %3615 = vmatprep.subr.bf16.mxu1 %v3707_v44 }
 0x217   :  { %3542 = vmatprep.mubr.bf16.mxu0 %v4050_v3  ;;  %3587 = vmatpush3.bf16.msra.mxu0 %v3706_v42 }
 0x218   :  { %3588 = vmatprep.subr.bf16.mxu0 %v3707_v44 }
 0x219   :  { %3623 = vmatpush3.bf16.msra.mxu1 %v3707_v44 }
 0x21a   :  { %3616 = vmatprep.subr.bf16.mxu1 %v3708_v46 }
 0x21b   :  { %3589 = vmatpush3.bf16.msra.mxu0 %v3707_v44 }
 0x21c   :  { %3575 = vmatmul.mubr.bf16.gmra.mrb[76].mxu1 %v4052_v5  ;;  %3590 = vmatprep.subr.bf16.mxu0 %v3708_v46 }
 0x21d   :  { %3624 = vmatpush3.bf16.msra.mxu1 %v3708_v46  ;;  %3602 = vmatprep.mubr.bf16.mxu1 %v4038_v43 }
 0x21e   :  { %3543 = vmatmul.mubr.bf16.gmra.mrb[76].mxu0 %v4052_v5  ;;  %3617 = vmatprep.subr.bf16.mxu1 %v3709_v48 }
 0x21f   :  { %3591 = vmatpush3.bf16.msra.mxu0 %v3708_v46  ;;  %3594 = vmatprep.mubr.bf16.mxu0 %v4008_v45 }
 0x220   :  { %3592 = vmatprep.subr.bf16.mxu0 %v3709_v48 }
 0x221   :  { %3625 = vmatpush3.bf16.msra.mxu1 %v3709_v48 }
 0x223   :  { %3593 = vmatpush3.bf16.msra.mxu0 %v3709_v48 }
 0x224   :  { %3603 = vmatmul.mubr.bf16.vlgmr.msra.gmra.mrb[80].mxu1 %v4040_v0 }
 0x225   :  { %3606 = vmatprep.mubr.bf16.mxu1 %v4050_v3 }
 0x226   :  { %3595 = vmatmul.mubr.bf16.vlgmr.msra.gmra.mrb[80].mxu0 %v4010_v47 }
 0x227   :  { %3598 = vmatprep.mubr.bf16.mxu0 %v4024_v20 }
 0x22c   :  { %3607 = vmatmul.mubr.bf16.gmra.mrb[84].mxu1 %v4052_v5 }
 0x22e   :  { %3599 = vmatmul.mubr.bf16.gmra.mrb[84].mxu0 %v4026_v22 }
 0x22f   :  { %v3340_v43 = vpop.f32.mrb[16].mxu0  ;;  %v3372_v49 = vpop.f32.mrb[16].mxu1 }
 0x230   :  { %v1359_v50 = vpop.f32.mrb[17].mxu0  ;;  %v1514_v51 = vpop.f32.mrb[17].mxu1 }
 0x231   :  { %v3341_v45 = vpop.f32.mrb[18].mxu0  ;;  %v3373_v52 = vpop.f32.mrb[18].mxu1 }
 0x232   :  { %v2711_v53 = vadd.f32 %v3373_v52, %v3340_v43  ;;  %v1362_v54 = vpop.f32.mrb[19].mxu0  ;;  %v1517_v55 = vpop.f32.mrb[19].mxu1 }
 0x233   :  { %v2703_v0 = vadd.f32 %v3372_v49, %v1362_v54  ;;  %v2695_v56 = vadd.f32 %v1517_v55, %v1359_v50 }
 0x24f   :  { %v3344_v57 = vpop.f32.mrb[20].mxu0  ;;  %v3376_v58 = vpop.f32.mrb[20].mxu1 }
 0x250   :  { %v1374_v47 = vpop.f32.mrb[21].mxu0  ;;  %v1530_v59 = vpop.f32.mrb[21].mxu1 }
 0x251   :  { %v3345_v20 = vpop.f32.mrb[22].mxu0  ;;  %v3377_v60 = vpop.f32.mrb[22].mxu1 }
 0x252   :  { %v2737_v61 = vadd.f32 %v3377_v60, %v3344_v57  ;;  %v1377_v62 = vpop.f32.mrb[23].mxu0  ;;  %v1533_v22 = vpop.f32.mrb[23].mxu1 }
 0x253   :  { %v2729_v63 = vadd.f32 %v3376_v58, %v1377_v62  ;;  %v2721_v1 = vadd.f32 %v1533_v22, %v1374_v47 }
 0x26f   :  { %v3348_v2 = vpop.f32.mrb[24].mxu0  ;;  %v3380_v3 = vpop.f32.mrb[24].mxu1 }
 0x270   :  { %v1389_v4 = vpop.f32.mrb[25].mxu0  ;;  %v1546_v5 = vpop.f32.mrb[25].mxu1 }
 0x271   :  { %v3349_v26 = vpop.f32.mrb[26].mxu0  ;;  %v3381_v6 = vpop.f32.mrb[26].mxu1 }
 0x272   :  { %v2755_v8 = vadd.f32 %v3381_v6, %v3348_v2  ;;  %v1392_v9 = vpop.f32.mrb[27].mxu0  ;;  %v1549_v10 = vpop.f32.mrb[27].mxu1 }
 0x273   :  { %v2750_v12 = vadd.f32 %v3380_v3, %v1392_v9  ;;  %v2745_v7 = vadd.f32 %v1549_v10, %v1389_v4 }
 0x28f   :  { %v3352_v13 = vpop.f32.mrb[28].mxu0  ;;  %v3384_v14 = vpop.f32.mrb[28].mxu1 }
 0x290   :  { %v1404_v15 = vpop.f32.mrb[29].mxu0  ;;  %v1562_v16 = vpop.f32.mrb[29].mxu1 }
 0x291   :  { %v3353_v17 = vpop.f32.mrb[30].mxu0  ;;  %v3385_v18 = vpop.f32.mrb[30].mxu1 }
 0x292   :  { %v1406_v11 = vpop.f32.mrb[31].mxu0  ;;  %v1564_v19 = vpop.f32.mrb[31].mxu1 }
 0x297   :  { %v3404_v21 = vpop.f32.mrb[32].mxu0  ;;  %v3436_v23 = vpop.f32.mrb[32].mxu1 }
 0x298   :  { %v2696_v24 = vadd.f32 %v3404_v21, %v2695_v56  ;;  %v1672_v25 = vpop.f32.mrb[33].mxu0  ;;  %v1827_v27 = vpop.f32.mrb[33].mxu1 }
 0x299   :  { %v3405_v28 = vpop.f32.mrb[34].mxu0  ;;  %v3437_v29 = vpop.f32.mrb[34].mxu1 }
 0x29a   :  { %v2704_v30 = vadd.f32 %v3405_v28, %v2703_v0  ;;  %v1674_v31 = vpop.f32.mrb[35].mxu0  ;;  %v1830_v32 = vpop.f32.mrb[35].mxu1 }
 0x29b   :  { %v2690_v33 = vadd.f32 %v1674_v31, %v1514_v51 }
 0x29f   :  { %v3408_v34 = vpop.f32.mrb[36].mxu0  ;;  %v3440_v35 = vpop.f32.mrb[36].mxu1 }
 0x2a0   :  { %v2722_v36 = vadd.f32 %v3408_v34, %v2721_v1  ;;  %v2712_v37 = vadd.f32 %v3440_v35, %v2711_v53  ;;  %v1687_v38 = vpop.f32.mrb[37].mxu0  ;;  %v1842_v39 = vpop.f32.mrb[37].mxu1 }
 0x2a1   :  { %v2697_v40 = vadd.f32 %v2696_v24, %v1842_v39  ;;  %v3409_v41 = vpop.f32.mrb[38].mxu0  ;;  %v3441_v42 = vpop.f32.mrb[38].mxu1 }
 0x2a2   :  { %v2730_v44 = vadd.f32 %v3409_v41, %v2729_v63  ;;  %v1689_v46 = vpop.f32.mrb[39].mxu0  ;;  %v1845_v48 = vpop.f32.mrb[39].mxu1 }
 0x2a3   :  { %v2716_v43 = vadd.f32 %v1689_v46, %v1530_v59  ;;  %v2705_v49 = vadd.f32 %v2704_v30, %v1845_v48 }
 0x2a7   :  { %v3412_v50 = vpop.f32.mrb[40].mxu0  ;;  %v3444_v45 = vpop.f32.mrb[40].mxu1 }
 0x2a8   :  { %v2746_v52 = vadd.f32 %v3412_v50, %v2745_v7  ;;  %v2738_v54 = vadd.f32 %v3444_v45, %v2737_v61  ;;  %v1702_v55 = vpop.f32.mrb[41].mxu0  ;;  %v1857_v51 = vpop.f32.mrb[41].mxu1 }
 0x2a9   :  { %v2723_v0 = vadd.f32 %v2722_v36, %v1857_v51  ;;  %v3413_v56 = vpop.f32.mrb[42].mxu0  ;;  %v3445_v57 = vpop.f32.mrb[42].mxu1 }
 0x2aa   :  { %v2751_v53 = vadd.f32 %v3413_v56, %v2750_v12  ;;  %v1704_v58 = vpop.f32.mrb[43].mxu0  ;;  %v1860_v47 = vpop.f32.mrb[43].mxu1 }
 0x2ab   :  { %v4116_v20 = vadd.f32 %v1704_v58, %v1546_v5  ;;  %v2731_v60 = vadd.f32 %v2730_v44, %v1860_v47 }
 0x2af   :  { %v3416_v62 = vpop.f32.mrb[44].mxu0  ;;  %v3448_v22 = vpop.f32.mrb[44].mxu1 }
 0x2b0   :  { %v2756_v63 = vadd.f32 %v3448_v22, %v2755_v8  ;;  %v1717_v59 = vpop.f32.mrb[45].mxu0  ;;  %v1872_v1 = vpop.f32.mrb[45].mxu1 }
 0x2b1   :  { %v4118_v2 = vadd.f32 %v2746_v52, %v1872_v1  ;;  %v3417_v3 = vpop.f32.mrb[46].mxu0  ;;  %v3449_v61 = vpop.f32.mrb[46].mxu1  ;;  %v4147_v1 = vld [vmem:[#allocation10] ss:$0 sm:$0xff] }
 0x2b2   :  { %v1719_v4 = vpop.f32.mrb[47].mxu0  ;;  %v1875_v26 = vpop.f32.mrb[47].mxu1 }
 0x2b3   :  { %v2752_v6 = vadd.f32 %v2751_v53, %v1875_v26 }
 0x2b7   :  { %v3500_v9 = vpop.f32.mrb[48].mxu1 }
 0x2b8   :  { %v3468_v10 = vpop.f32.mrb[48].mxu0  ;;  %v2147_v12 = vpop.f32.mrb[49].mxu1 }
 0x2b9   :  { %v2682_v7 = vadd.f32 %v3468_v10, %v1830_v32  ;;  %v1985_v13 = vpop.f32.mrb[49].mxu0  ;;  %v3501_v5 = vpop.f32.mrb[50].mxu1 }
 0x2ba   :  { %v3469_v14 = vpop.f32.mrb[50].mxu0  ;;  %v2149_v15 = vpop.f32.mrb[51].mxu1 }
 0x2bb   :  { %v4120_v16 = vadd.f32 %v3469_v14, %v3436_v23  ;;  %v4122_v8 = vadd.f32 %v3501_v5, %v2682_v7  ;;  %v1988_v17 = vpop.f32.mrb[51].mxu0  ;;  %v4124_v18 = vadd.f32 %v2149_v15, %v1985_v13 }
 0x2bc   :  { %v2677_v11 = vadd.f32 %v1988_v17, %v1827_v27 }
 0x2be   :  { %v4126_v19 = vadd.f32 %v3500_v9, %v2677_v11 }
 0x2bf   :  { %v3504_v21 = vpop.f32.mrb[52].mxu1 }
 0x2c0   :  { %v3472_v24 = vpop.f32.mrb[52].mxu0  ;;  %v2162_v25 = vpop.f32.mrb[53].mxu1 }
 0x2c1   :  { %v2706_v28 = vadd.f32 %v3472_v24, %v2705_v49  ;;  %v2001_v29 = vpop.f32.mrb[53].mxu0  ;;  %v3505_v30 = vpop.f32.mrb[54].mxu1 }
 0x2c2   :  { %v2691_v31 = vadd.f32 %v2690_v33, %v2001_v29  ;;  %v3473_v32 = vpop.f32.mrb[54].mxu0  ;;  %v2164_v34 = vpop.f32.mrb[55].mxu1 }
 0x2c3   :  { %v4128_v35 = vadd.f32 %v3473_v32, %v2712_v37  ;;  %v4130_v23 = vadd.f32 %v3505_v30, %v2706_v28  ;;  %v2004_v36 = vpop.f32.mrb[55].mxu0 }
 0x2c4   :  { %v2698_v38 = vadd.f32 %v2697_v40, %v2004_v36  ;;  %v4132_v39 = vadd.f32 %v2691_v31, %v2164_v34 }
 0x2c6   :  { %v4134_v27 = vadd.f32 %v3504_v21, %v2698_v38 }
 0x2c7   :  { %v3508_v41 = vpop.f32.mrb[56].mxu1 }
 0x2c8   :  { %v3476_v42 = vpop.f32.mrb[56].mxu0  ;;  %v2177_v44 = vpop.f32.mrb[57].mxu1 }
 0x2c9   :  { %v2732_v46 = vadd.f32 %v3476_v42, %v2731_v60  ;;  %v2017_v48 = vpop.f32.mrb[57].mxu0  ;;  %v3509_v49 = vpop.f32.mrb[58].mxu1 }
 0x2ca   :  { %v2717_v50 = vadd.f32 %v2716_v43, %v2017_v48  ;;  %v3477_v33 = vpop.f32.mrb[58].mxu0  ;;  %v2179_v45 = vpop.f32.mrb[59].mxu1 }
 0x2cb   :  { %v4136_v52 = vadd.f32 %v3477_v33, %v2738_v54  ;;  %v4138_v37 = vadd.f32 %v3509_v49, %v2732_v46  ;;  %v2020_v55 = vpop.f32.mrb[59].mxu0 }
 0x2cc   :  { %v2724_v51 = vadd.f32 %v2723_v0, %v2020_v55  ;;  %v4140_v40 = vadd.f32 %v2717_v50, %v2179_v45 }
 0x2ce   :  { %v4142_v56 = vadd.f32 %v3508_v41, %v2724_v51 }
 0x2cf   :  { %v3512_v57 = vpop.f32.mrb[60].mxu1 }
 0x2d0   :  { %v3480_v53 = vpop.f32.mrb[60].mxu0  ;;  %v2192_v58 = vpop.f32.mrb[61].mxu1 }
 0x2d1   :  { %v2753_v47 = vadd.f32 %v3480_v53, %v2752_v6  ;;  %v2033_v60 = vpop.f32.mrb[61].mxu0  ;;  %v3513_v62 = vpop.f32.mrb[62].mxu1 }
 0x2d2   :  { %v2743_v43 = vadd.f32 %v4116_v20, %v2033_v60  ;;  %v3481_v22 = vpop.f32.mrb[62].mxu0  ;;  %v2194_v59 = vpop.f32.mrb[63].mxu1 }
 0x2d3   :  { %v4145_v54 = vadd.f32 %v3481_v22, %v2756_v63  ;;  %v4149_v3 = vadd.f32 %v3513_v62, %v2753_v47  ;;  %v2036_v0 = vpop.f32.mrb[63].mxu0 }
 0x2d4   :  { %v2748_v61 = vadd.f32 %v4118_v2, %v2036_v0  ;;  %v2744_v4 = vadd.f32 %v2743_v43, %v2194_v59 }
 0x2d6   :  { %v2749_v26 = vadd.f32 %v3512_v57, %v2748_v61  ;;  %v2777_v9 = vadd.f32 %v4147_v1, %v2744_v4 }
 0x2d7   :  { %v3564_v6 = vpop.f32.mrb[64].mxu1 }
 0x2d8   :  { %v2778_v10 = vadd.f32 %v4147_v1, %v2749_v26  ;;  %v2460_v12 = vpop.f32.mrb[65].mxu1  ;;  %vm2793_vm0 = vcmp.ge.f32.partialorder %v2777_v9, 0.0  ;;  %v2809_v20 = vmul.f32 0.2, %v2777_v9 }
 0x2d9   :  { %v3532_v7 = vpop.f32.mrb[64].mxu0  ;;  %v3565_v63 = vpop.f32.mrb[66].mxu1 }
 0x2da   :  { %v2305_v13 = vpop.f32.mrb[65].mxu0  ;;  %v2462_v5 = vpop.f32.mrb[67].mxu1  ;;  %v4154_v14 = vsel %vm2793_vm0, %v2777_v9, %v2809_v20  ;;  %vm2794_vm1 = vcmp.ge.f32.partialorder %v2778_v10, 0.0  ;;  %v2810_v15 = vmul.f32 0.2, %v2778_v10 }
 0x2db   :  { %v3533_v17 = vpop.f32.mrb[66].mxu0  ;;  %v2841_v2 = vmul.f32 %v4154_v14, %v4154_v14 }
 0x2dc   :  { %v2307_v11 = vpop.f32.mrb[67].mxu0  ;;  %v4158_v21 = vsel %vm2794_vm1, %v2778_v10, %v2810_v15 }
 0x2dd   :  { %2869 = vadd.xlane.f32.xlu0 %v2841_v2  ;;  %v2842_v24 = vmul.f32 %v4158_v21, %v4158_v21 }
 0x2df   :  { %2871 = vadd.xlane.f32.xlu1 %v2842_v24  ;;  %v3568_v25 = vpop.f32.mrb[68].mxu1 }
 0x2e0   :  { %v2472_v28 = vpop.f32.mrb[69].mxu1 }
 0x2e1   :  { %v3536_v29 = vpop.f32.mrb[68].mxu0  ;;  %v4163_v30 = vadd.f32 %v4124_v18, %v2472_v28  ;;  %v3569_v31 = vpop.f32.mrb[70].mxu1 }
 0x2e2   :  { %v2688_v32 = vadd.f32 %v3536_v29, %v4120_v16  ;;  %v2317_v34 = vpop.f32.mrb[69].mxu0  ;;  %v2475_v36 = vpop.f32.mrb[71].mxu1 }
 0x2e3   :  { %v2679_v38 = vadd.f32 %v4126_v19, %v2317_v34  ;;  %v3537_v41 = vpop.f32.mrb[70].mxu0 }
 0x2e4   :  { %v2689_v42 = vadd.f32 %v3569_v31, %v2688_v32  ;;  %v2320_v44 = vpop.f32.mrb[71].mxu0 }
 0x2e5   :  { %v2684_v46 = vadd.f32 %v4122_v8, %v2320_v44  ;;  %v4168_v48 = vadd.f32 %v2679_v38, %v2475_v36 }
 0x2e6   :  { %v2768_v49 = vadd.f32 %v4147_v1, %v2689_v42 }
 0x2e7   :  { %v3572_v50 = vpop.f32.mrb[72].mxu1  ;;  %v4171_v33 = vadd.f32 %v3568_v25, %v2684_v46 }
 0x2e8   :  { %v2488_v18 = vpop.f32.mrb[73].mxu1  ;;  %vm2784_vm2 = vcmp.ge.f32.partialorder %v2768_v49, 0.0  ;;  %v2800_v45 = vmul.f32 0.2, %v2768_v49 }
 0x2e9   :  { %v3540_v16 = vpop.f32.mrb[72].mxu0  ;;  %v2693_v55 = vadd.f32 %v4132_v39, %v2488_v18  ;;  %v3573_v51 = vpop.f32.mrb[74].mxu1 }
 0x2ea   :  { %v2714_v19 = vadd.f32 %v3540_v16, %v4128_v35  ;;  %v2332_v57 = vpop.f32.mrb[73].mxu0  ;;  %v2491_v53 = vpop.f32.mrb[75].mxu1  ;;  %v4175_v58 = vsel %vm2784_vm2, %v2768_v49, %v2800_v45 }
 0x2eb   :  { %v2700_v8 = vadd.f32 %v4134_v27, %v2332_v57  ;;  %v3541_v47 = vpop.f32.mrb[74].mxu0  ;;  %v2832_v60 = vmul.f32 %v4175_v58, %v4175_v58 }
 0x2ec   :  { %v2715_v62 = vadd.f32 %v3573_v51, %v2714_v19  ;;  %v2335_v43 = vpop.f32.mrb[75].mxu0 }
 0x2ed   :  { %v2708_v22 = vadd.f32 %v4130_v23, %v2335_v43  ;;  %v2701_v59 = vadd.f32 %v2700_v8, %v2491_v53  ;;  %2851 = vadd.xlane.f32.xlu1 %v2832_v60 }
 0x2ee   :  { %v2772_v39 = vadd.f32 %v4147_v1, %v2715_v62 }
 0x2ef   :  { %v3576_v0 = vpop.f32.mrb[76].mxu1  ;;  %v2709_v35 = vadd.f32 %v3572_v50, %v2708_v22 }
 0x2f0   :  { %v2504_v61 = vpop.f32.mrb[77].mxu1  ;;  %vm2788_vm3 = vcmp.ge.f32.partialorder %v2772_v39, 0.0  ;;  %v2804_v4 = vmul.f32 0.2, %v2772_v39 }
 0x2f1   :  { %v3544_v26 = vpop.f32.mrb[76].mxu0  ;;  %v2719_v27 = vadd.f32 %v4140_v40, %v2504_v61  ;;  %v3577_v9 = vpop.f32.mrb[78].mxu1 }
 0x2f2   :  { %v2740_v6 = vadd.f32 %v3544_v26, %v4136_v52  ;;  %v2347_v10 = vpop.f32.mrb[77].mxu0  ;;  %v2507_v12 = vpop.f32.mrb[79].mxu1  ;;  %v4184_v20 = vsel %vm2788_vm3, %v2772_v39, %v2804_v4 }
 0x2f3   :  { %v2726_v23 = vadd.f32 %v4142_v56, %v2347_v10  ;;  %v3545_v7 = vpop.f32.mrb[78].mxu0  ;;  %v2836_v63 = vmul.f32 %v4184_v20, %v4184_v20 }
 0x2f4   :  { %v2741_v13 = vadd.f32 %v3577_v9, %v2740_v6  ;;  %v2350_v5 = vpop.f32.mrb[79].mxu0 }
 0x2f5   :  { %v2734_v15 = vadd.f32 %v4138_v37, %v2350_v5  ;;  %v2727_v17 = vadd.f32 %v2726_v23, %v2507_v12  ;;  %2859 = vadd.xlane.f32.xlu1 %v2836_v63 }
 0x2f6   :  { %v2776_v40 = vadd.f32 %v4147_v1, %v2741_v13 }
 0x2f7   :  { %v3604_v2 = vpop.f32.mrb[80].mxu1  ;;  %v2735_v52 = vadd.f32 %v3576_v0, %v2734_v15 }
 0x2f8   :  { %v2702_v11 = vadd.f32 %v3604_v2, %v2701_v59  ;;  %v2645_v24 = vpop.f32.mrb[81].mxu1  ;;  %vm2792_vm4 = vcmp.ge.f32.partialorder %v2776_v40, 0.0  ;;  %v2808_v25 = vmul.f32 0.2, %v2776_v40 }
 0x2f9   :  { %v3596_v28 = vpop.f32.mrb[80].mxu0  ;;  %v3605_v56 = vpop.f32.mrb[82].mxu1 }
 0x2fa   :  { %v2770_v29 = vadd.f32 %v4147_v1, %v2702_v11  ;;  %v2618_v31 = vpop.f32.mrb[81].mxu0  ;;  %v2710_v32 = vadd.f32 %v3605_v56, %v2709_v35  ;;  %v2647_v34 = vpop.f32.mrb[83].mxu1  ;;  %v4192_v36 = vsel %vm2792_vm4, %v2776_v40, %v2808_v25  ;;  %v2779_v28 = vadd.f32 %v4147_v1, %v4149_v3 }
 0x2fb   :  { %v3597_v37 = vpop.f32.mrb[82].mxu0  ;;  %v2694_v38 = vadd.f32 %v2693_v55, %v2647_v34  ;;  %v2840_v41 = vmul.f32 %v4192_v36, %v4192_v36 }
 0x2fc   :  { %v2771_v42 = vadd.f32 %v4147_v1, %v2710_v32  ;;  %v2620_v44 = vpop.f32.mrb[83].mxu0  ;;  %vm2786_vm5 = vcmp.ge.f32.partialorder %v2770_v29, 0.0  ;;  %v2802_v46 = vmul.f32 0.2, %v2770_v29  ;;  %v2811_v37 = vmul.f32 0.2, %v2779_v28 }
 0x2fd   :  { %v2769_v49 = vadd.f32 %v4147_v1, %v2694_v38  ;;  %2867 = vadd.xlane.f32.xlu1 %v2840_v41  ;;  %vm2795_vm15 = vcmp.ge.f32.partialorder %v2779_v28, 0.0 }
 0x2fe   :  { %v4198_v50 = vsel %vm2786_vm5, %v2770_v29, %v2802_v46  ;;  %vm2787_vm6 = vcmp.ge.f32.partialorder %v2771_v42, 0.0  ;;  %v2803_v18 = vmul.f32 0.2, %v2771_v42  ;;  %v4251_v3 = vsel %vm2795_vm15, %v2779_v28, %v2811_v37 }
 0x2ff   :  { %v3608_v45 = vpop.f32.mrb[84].mxu1  ;;  %v2834_v16 = vmul.f32 %v4198_v50, %v4198_v50  ;;  %vm2785_vm7 = vcmp.ge.f32.partialorder %v2769_v49, 0.0  ;;  %v2801_v55 = vmul.f32 0.2, %v2769_v49  ;;  %v2843_v38 = vmul.f32 %v4251_v3, %v4251_v3 }
 0x300   :  { %v2728_v51 = vadd.f32 %v3608_v45, %v2727_v17  ;;  %v2660_v19 = vpop.f32.mrb[85].mxu1  ;;  %v4202_v57 = vsel %vm2787_vm6, %v2771_v42, %v2803_v18 }
 0x301   :  { %v3600_v53 = vpop.f32.mrb[84].mxu0  ;;  %v3609_v8 = vpop.f32.mrb[86].mxu1  ;;  %2855 = vadd.xlane.f32.xlu1 %v2834_v16  ;;  %v2835_v47 = vmul.f32 %v4202_v57, %v4202_v57  ;;  %v4208_v39 = vsel %vm2785_vm7, %v2769_v49, %v2801_v55 }
 0x302   :  { %v2681_v60 = vadd.f32 %v3600_v53, %v4168_v48  ;;  %v2774_v62 = vadd.f32 %v4147_v1, %v2728_v51  ;;  %v2630_v43 = vpop.f32.mrb[85].mxu0  ;;  %v2736_v22 = vadd.f32 %v3609_v8, %v2735_v52  ;;  %v2662_v59 = vpop.f32.mrb[87].mxu1  ;;  %v2780_v48 = vadd.f32 %v4147_v1, %v4145_v54 }
 0x303   :  { %v3601_v0 = vpop.f32.mrb[86].mxu0  ;;  %v2720_v35 = vadd.f32 %v2719_v27, %v2662_v59  ;;  %2857 = vadd.xlane.f32.xlu0 %v2835_v47  ;;  %v2833_v10 = vmul.f32 %v4208_v39, %v4208_v39 }
 0x304   :  { %v2766_v61 = vadd.f32 %v4147_v1, %v2681_v60  ;;  %v2775_v4 = vadd.f32 %v4147_v1, %v2736_v22  ;;  %v2686_v26 = vadd.f32 %v3601_v0, %v4171_v33  ;;  %v2632_v9 = vpop.f32.mrb[87].mxu0  ;;  %vm2790_vm8 = vcmp.ge.f32.partialorder %v2774_v62, 0.0 }
 0x305   :  { %v2676_v6 = vadd.f32 %v4163_v30, %v2632_v9  ;;  %v2806_v12 = vmul.f32 0.2, %v2774_v62  ;;  %vm2796_vm12 = vcmp.ge.f32.partialorder %v2780_v48, 0.0  ;;  %v2812_v15 = vmul.f32 0.2, %v2780_v48 }
 0x306   :  { %v2767_v27 = vadd.f32 %v4147_v1, %v2686_v26  ;;  %vm2782_vm9 = vcmp.ge.f32.partialorder %v2766_v61, 0.0  ;;  %v2798_v23 = vmul.f32 0.2, %v2766_v61  ;;  %vm2791_vm10 = vcmp.ge.f32.partialorder %v2775_v4, 0.0 }
 0x307   :  { %v2765_v7 = vadd.f32 %v4147_v1, %v2676_v6  ;;  %2853 = vadd.xlane.f32.xlu0 %v2833_v10  ;;  %v4220_v63 = vsel %vm2790_vm8, %v2774_v62, %v2806_v12  ;;  %v2807_v33 = vmul.f32 0.2, %v2775_v4  ;;  %v2773_v17 = vadd.f32 %v4147_v1, %v2720_v35 }
 0x308   :  { %v2838_v54 = vmul.f32 %v4220_v63, %v4220_v63  ;;  %v4224_v13 = vsel %vm2782_vm9, %v2766_v61, %v2798_v23  ;;  %vm2783_vm11 = vcmp.ge.f32.partialorder %v2767_v27, 0.0  ;;  %v2799_v30 = vmul.f32 0.2, %v2767_v27 }
 0x309   :  { %v2830_v5 = vmul.f32 %v4224_v13, %v4224_v13  ;;  %v4231_v2 = vsel %vm2791_vm10, %v2775_v4, %v2807_v33  ;;  %v2797_v52 = vmul.f32 0.2, %v2765_v7  ;;  %vm2781_vm13 = vcmp.ge.f32.partialorder %v2765_v7, 0.0 }
 0x30a   :  { %2863 = vadd.xlane.f32.xlu1 %v2838_v54  ;;  %v4229_v40 = vsel %vm2783_vm11, %v2767_v27, %v2799_v30  ;;  %v2839_v24 = vmul.f32 %v4231_v2, %v4231_v2  ;;  %v4237_v25 = vsel %vm2796_vm12, %v2780_v48, %v2812_v15  ;;  %v2805_v29 = vmul.f32 0.2, %v2773_v17 }
 0x30b   :  { %2847 = vadd.xlane.f32.xlu0 %v2830_v5  ;;  %v2831_v11 = vmul.f32 %v4229_v40, %v4229_v40  ;;  %v4241_v56 = vsel %vm2781_vm13, %v2765_v7, %v2797_v52  ;;  %vm2789_vm14 = vcmp.ge.f32.partialorder %v2773_v17, 0.0  ;;  %v2844_v31 = vmul.f32 %v4237_v25, %v4237_v25 }
 0x30c   :  { %v2829_v32 = vmul.f32 %v4241_v56, %v4241_v56  ;;  %v4247_v34 = vsel %vm2789_vm14, %v2773_v17, %v2805_v29 }
 0x30d   :  { %v2837_v1 = vmul.f32 %v4247_v34, %v4247_v34 }
 0x30e   :  { %2849 = vadd.xlane.f32.xlu1 %v2831_v11 }
 0x30f   :  { %2865 = vadd.xlane.f32.xlu0 %v2839_v24 }
 0x312   :  { %2875 = vadd.xlane.f32.xlu1 %v2844_v31 }
 0x313   :  { %2845 = vadd.xlane.f32.xlu0 %v2829_v32 }
 0x317   :  { %2861 = vadd.xlane.f32.xlu0 %v2837_v1 }
 0x31b   :  { %2873 = vadd.xlane.f32.xlu0 %v2843_v38 }
 0x36a   :  { %v2870_v41 = vpop.xlane.xlu0 %2869 }
 0x36b   :  { %v2889_v42 = vmul.f32 0.25, %v2870_v41 }
 0x36c   :  { %v2872_v44 = vpop.xlane.xlu1 %2871 }
 0x36d   :  { %v2905_v46 = vadd.f32 1e-08, %v2889_v42  ;;  %v2890_v49 = vmul.f32 0.25, %v2872_v44 }
 0x36f   :  { %3710 = vrsqrt.f32 %v2905_v46  ;;  %v2906_v18 = vadd.f32 1e-08, %v2890_v49 }
 0x371   :  { %3712 = vrsqrt.f32 %v2906_v18 }
 0x379   :  { %v3711_v45 = vpop.eup %3710 }
 0x37a   :  { %v2937_v16 = vmul.f32 %v3711_v45, %v4154_v14  ;;  %v2852_v55 = vpop.xlane.xlu1 %2851 }
 0x37b   :  { %v3713_v51 = vpop.eup %3712  ;;  %v2880_v19 = vmul.f32 0.25, %v2852_v55 }
 0x37c   :  { %2953 = vst [vmem:[#allocation11 + $0x60] sm:$0xff] %v2937_v16  ;;  %v2938_v53 = vmul.f32 %v3713_v51, %v4158_v21 }
 0x37d   :  { %v2896_v8 = vadd.f32 1e-08, %v2880_v19 }
 0x37e   :  { %2954 = vst [vmem:[#allocation11 + $0x68] sm:$0xff] %v2938_v53 }
 0x37f   :  { %3714 = vrsqrt.f32 %v2896_v8 }
 0x382   :  { %v2860_v47 = vpop.xlane.xlu1 %2859 }
 0x383   :  { %v2884_v60 = vmul.f32 0.25, %v2860_v47 }
 0x385   :  { %v2900_v62 = vadd.f32 1e-08, %v2884_v60 }
 0x387   :  { %3716 = vrsqrt.f32 %v2900_v62 }
 0x389   :  { %v3715_v43 = vpop.eup %3714 }
 0x38a   :  { %v2928_v22 = vmul.f32 %v3715_v43, %v4175_v58  ;;  %v2868_v59 = vpop.xlane.xlu1 %2867 }
 0x38b   :  { %v2888_v0 = vmul.f32 0.25, %v2868_v59 }
 0x38c   :  { %2944 = vst [vmem:[#allocation11 + $0x18] sm:$0xff] %v2928_v22 }
 0x38d   :  { %v2904_v14 = vadd.f32 1e-08, %v2888_v0 }
 0x38e   :  { %v2856_v35 = vpop.xlane.xlu1 %2855 }
 0x38f   :  { %3718 = vrsqrt.f32 %v2904_v14  ;;  %v2882_v61 = vmul.f32 0.25, %v2856_v35 }
 0x390   :  { %v2858_v4 = vpop.xlane.xlu0 %2857 }
 0x391   :  { %v3717_v26 = vpop.eup %3716  ;;  %v2898_v21 = vadd.f32 1e-08, %v2882_v61  ;;  %v2883_v9 = vmul.f32 0.25, %v2858_v4 }
 0x392   :  { %v2932_v48 = vmul.f32 %v3717_v26, %v4184_v20 }
 0x393   :  { %3720 = vrsqrt.f32 %v2898_v21  ;;  %v2899_v6 = vadd.f32 1e-08, %v2883_v9 }
 0x394   :  { %2948 = vst [vmem:[#allocation11 + $0x38] sm:$0xff] %v2932_v48  ;;  %v2854_v10 = vpop.xlane.xlu0 %2853 }
 0x395   :  { %3722 = vrsqrt.f32 %v2899_v6  ;;  %v2881_v12 = vmul.f32 0.25, %v2854_v10 }
 0x397   :  { %v2897_v58 = vadd.f32 1e-08, %v2881_v12  ;;  %v2864_v27 = vpop.xlane.xlu1 %2863 }
 0x398   :  { %v2886_v23 = vmul.f32 0.25, %v2864_v27  ;;  %v2848_v7 = vpop.xlane.xlu0 %2847 }
 0x399   :  { %v3719_v33 = vpop.eup %3718  ;;  %3724 = vrsqrt.f32 %v2897_v58  ;;  %v2878_v54 = vmul.f32 0.25, %v2848_v7 }
 0x39a   :  { %v2936_v30 = vmul.f32 %v3719_v33, %v4192_v36  ;;  %v2902_v5 = vadd.f32 1e-08, %v2886_v23 }
 0x39b   :  { %v2894_v15 = vadd.f32 1e-08, %v2878_v54  ;;  %v2850_v17 = vpop.xlane.xlu1 %2849 }
 0x39c   :  { %2952 = vst [vmem:[#allocation11 + $0x58] sm:$0xff] %v2936_v30  ;;  %3726 = vrsqrt.f32 %v2902_v5  ;;  %v2879_v20 = vmul.f32 0.25, %v2850_v17  ;;  %v2866_v52 = vpop.xlane.xlu0 %2865 }
 0x39d   :  { %v3721_v11 = vpop.eup %3720  ;;  %3728 = vrsqrt.f32 %v2894_v15  ;;  %v2887_v24 = vmul.f32 0.25, %v2866_v52 }
 0x39e   :  { %v2930_v28 = vmul.f32 %v3721_v11, %v4198_v50  ;;  %v2895_v29 = vadd.f32 1e-08, %v2879_v20 }
 0x39f   :  { %v3723_v31 = vpop.eup %3722  ;;  %v2903_v32 = vadd.f32 1e-08, %v2887_v24  ;;  %v2876_v37 = vpop.xlane.xlu1 %2875 }
 0x3a0   :  { %2946 = vst [vmem:[#allocation11 + $0x28] sm:$0xff] %v2930_v28  ;;  %v2931_v1 = vmul.f32 %v3723_v31, %v4202_v57  ;;  %3730 = vrsqrt.f32 %v2895_v29  ;;  %v2892_v36 = vmul.f32 0.25, %v2876_v37  ;;  %v2846_v38 = vpop.xlane.xlu0 %2845 }
 0x3a1   :  { %3732 = vrsqrt.f32 %v2903_v32  ;;  %v2877_v41 = vmul.f32 0.25, %v2846_v38 }
 0x3a2   :  { %2947 = vst [vmem:[#allocation11 + $0x30] sm:$0xff] %v2931_v1  ;;  %v2908_v42 = vadd.f32 1e-08, %v2892_v36 }
 0x3a3   :  { %v3725_v44 = vpop.eup %3724  ;;  %v2893_v46 = vadd.f32 1e-08, %v2877_v41 }
 0x3a4   :  { %v2929_v49 = vmul.f32 %v3725_v44, %v4208_v39  ;;  %3734 = vrsqrt.f32 %v2908_v42  ;;  %v2862_v50 = vpop.xlane.xlu0 %2861 }
 0x3a5   :  { %3736 = vrsqrt.f32 %v2893_v46  ;;  %v2885_v18 = vmul.f32 0.25, %v2862_v50 }
 0x3a6   :  { %v3727_v45 = vpop.eup %3726  ;;  %2945 = vst [vmem:[#allocation11 + $0x20] sm:$0xff] %v2929_v49 }
 0x3a7   :  { %v3729_v16 = vpop.eup %3728  ;;  %v2934_v57 = vmul.f32 %v3727_v45, %v4220_v63  ;;  %v2901_v55 = vadd.f32 1e-08, %v2885_v18 }
 0x3a8   :  { %v2926_v51 = vmul.f32 %v3729_v16, %v4224_v13  ;;  %v2874_v19 = vpop.xlane.xlu0 %2873 }
 0x3a9   :  { %2950 = vst [vmem:[#allocation11 + $0x48] sm:$0xff] %v2934_v57  ;;  %3738 = vrsqrt.f32 %v2901_v55  ;;  %v2891_v53 = vmul.f32 0.25, %v2874_v19 }
 0x3aa   :  { %v3731_v8 = vpop.eup %3730  ;;  %2942 = vst [vmem:[#allocation11 + $0x8] sm:$0xff] %v2926_v51 }
 0x3ab   :  { %v3733_v47 = vpop.eup %3732  ;;  %v2927_v39 = vmul.f32 %v3731_v8, %v4229_v40  ;;  %v2907_v60 = vadd.f32 1e-08, %v2891_v53 }
 0x3ac   :  { %v2935_v62 = vmul.f32 %v3733_v47, %v4231_v2 }
 0x3ad   :  { %2943 = vst [vmem:[#allocation11 + $0x10] sm:$0xff] %v2927_v39  ;;  %3740 = vrsqrt.f32 %v2907_v60 }
 0x3ae   :  { %v3735_v43 = vpop.eup %3734  ;;  %2951 = vst [vmem:[#allocation11 + $0x50] sm:$0xff] %v2935_v62 }
 0x3af   :  { %v3737_v63 = vpop.eup %3736  ;;  %v2940_v22 = vmul.f32 %v3735_v43, %v4237_v25 }
 0x3b0   :  { %v2925_v13 = vmul.f32 %v3737_v63, %v4241_v56 }
 0x3b1   :  { %2956 = vst [vmem:[#allocation11 + $0x78] sm:$0xff] %v2940_v22 }
 0x3b2   :  { %2941 = vst [vmem:[#allocation11] sm:$0xff] %v2925_v13 }
 0x3b3   :  { %v3739_v59 = vpop.eup %3738 }
 0x3b4   :  { %v2933_v0 = vmul.f32 %v3739_v59, %v4247_v34 }
 0x3b6   :  { %2949 = vst [vmem:[#allocation11 + $0x40] sm:$0xff] %v2933_v0 }
 0x3b7   :  { %v3741_v40 = vpop.eup %3740 }
 0x3b8   :  { %v2939_v2 = vmul.f32 %v3741_v40, %v4251_v3 }
 0x3ba   :  { %2955 = vst [vmem:[#allocation11 + $0x70] sm:$0xff] %v2939_v2 }
 0x3bb   :  { %3863 = shalt.err (!%p3860_p2)
}
 0x3bc   :  { %s3864_s6 = scalar_lea.hbm %s4288_s5, 2048 }
 0x3bd   :  { %p3865_p3 = scmp.ne.s32.totalorder %s4288_s5, %s3864_s6  ;;  %p3868_p4 = scmp.lt.u32.totalorder %s3864_s6, %s4288_s5 }
 0x3bf   :  { %p3870_p5 = pnand %p3868_p4, %p3865_p3 }
 0x3c1   :  { %3873 = shalt.err (!%p3870_p5)
}
 0x3c2   :  { %s3892_s11 = smov 128   ;;  %s3893_s12 = smov 8  }
 0x3c3   :  { %2968 = dma.vmem_to_hbm [thread:$0]  %s2963_s28, 2048, %s4288_s5, [#allocation4], %s3892_s11, %s3892_s11, %s3893_s12  }
 0x3c4   :  { %3880 = dma.done.wait [#allocation4], 2048  }
 0x3c5   :  { %3881 = vsyncadd [#allocation4], 4294965248 }
 0x3c6   :  { %2972 = vsyncpa [#allocation3], 1 }
 0x3c7   :  { %2973 = vsyncpa [#allocation6], 1 }
 0x3c8   :  { %2974 = vsyncpa [#allocation9], 1 }
 0x3c9   :  { %2975 = vsyncpa [#allocation4], 1 }

</bundles_post_ra>
